<compile_context>
chip_gen: v7x
topology: tpu7x:2x2x1
jax: 0.10.0
libtpu: 0.0.40
codegen_flags: <defaults>
</compile_context>

<pallas_src>
import functools

import jax
import jax.numpy as jnp
from jax.experimental import pallas as pl
from jax.experimental.pallas import tpu as pltpu


# ---------------------------------------------------------------------------
# Parameter slab layout (single (8, 128) f32 tile), H = hidden size:
#   row 0, cols [0   , H   )  : w_in   (Linear(1,H) weight, stored as a row)
#   row 0, cols [H   , 2H  )  : b_in
#   row 0, cols [2H  , 6H  )  : b_g    (= b_ih + b_hh, 4H values, [i,f,g,o])
#   row 0, cols [6H  , 7H  )  : w_out  (Linear(H,1) weight, stored as a row)
#   row 0, col   7H           : b_out
#   rows [1   , 1+H ), cols [0, 4H) : w_ih  (stored transposed, (H, 4H))
#   rows [1+H , 1+2H), cols [0, 4H) : w_hh  (stored transposed, (H, 4H))
# ---------------------------------------------------------------------------
def pack_params(params, hidden):
    H = hidden
    slab = jnp.zeros((8, 128), jnp.float32)
    slab = slab.at[0, 0:H].set(params["w_in"][0])
    slab = slab.at[0, H:2 * H].set(params["b_in"][0])
    slab = slab.at[0, 2 * H:6 * H].set(params["b_g"][0])
    slab = slab.at[0, 6 * H:7 * H].set(params["w_out"][:, 0])
    slab = slab.at[0, 7 * H].set(params["b_out"][0, 0])
    slab = slab.at[1:1 + H, 0:4 * H].set(params["w_ih"])
    slab = slab.at[1 + H:1 + 2 * H, 0:4 * H].set(params["w_hh"])
    return slab


def nni_seq_kernel(x_ref, p_ref, o_ref, *, hidden):
    H = hidden
    B, T = x_ref.shape

    x = x_ref[...]                                   # (B, T) f32, single load
    p = p_ref[...]                                   # (8, 128) f32 param slab

    # Static (free) slices of the loaded slab.
    row0 = p[0:1, :]                                 # (1, 128)
    w_in = row0[:, 0:H]                              # (1, H)
    b_in = row0[:, H:2 * H]                          # (1, H)
    b_g = row0[:, 2 * H:6 * H]                       # (1, 4H)
    w_out = row0[:, 6 * H:7 * H]                     # (1, H)
    b_out = row0[:, 7 * H:7 * H + 1]                 # (1, 1)
    w_ih = p[1:1 + H, 0:4 * H]                       # (H, 4H)
    w_hh = p[1 + H:1 + 2 * H, 0:4 * H]               # (H, 4H)

    # Per-lane scale: 2.0 on the g block so one sigmoid dispatch covers all
    # 4 gates (tanh(g) = 2*sigmoid(2g) - 1). Hoisted constant.
    g_scale = jnp.concatenate(
        [jnp.ones((1, 2 * H), jnp.float32),
         jnp.full((1, H), 2.0, jnp.float32),
         jnp.ones((1, H), jnp.float32)], axis=1)     # (1, 4H)

    # --- Hoisted x-side work: to_in + x contribution to gates (parallel in T). ---
    gates_x = []
    for t in range(T):
        xin = x[:, t:t + 1] * w_in + b_in            # (B, H)
        gx = b_g                                     # (1, 4H) -> broadcasts
        for k in range(H):
            gx = gx + xin[:, k:k + 1] * w_ih[k:k + 1, :]
        gates_x.append(gx)                           # (B, 4H)

    # --- Serial recurrence: h-term MACs + 2 EUP dispatches per step. ---
    h = jnp.zeros((B, H), jnp.float32)
    c = jnp.zeros((B, H), jnp.float32)
    hs = []
    for t in range(T):                               # fully unrolled (T static)
        gates = gates_x[t]
        for k in range(H):
            gates = gates + h[:, k:k + 1] * w_hh[k:k + 1, :]
        s = jax.nn.sigmoid(gates * g_scale)          # one EUP dispatch, all gates
        i_g = s[:, 0 * H:1 * H]
        f_g = s[:, 1 * H:2 * H]
        g_g = 2.0 * s[:, 2 * H:3 * H] - 1.0          # == tanh(g pre-activation)
        o_g = s[:, 3 * H:4 * H]
        c = f_g * c + i_g * g_g
        h = o_g * jnp.tanh(c)                        # second EUP dispatch
        hs.append(h)

    # --- to_out: whole-slab projection after the loop (off the serial chain). ---
    out = jnp.broadcast_to(b_out, (B, T))            # hoisted broadcast
    for k in range(H):
        hk = jnp.concatenate([hh[:, k:k + 1] for hh in hs], axis=1)   # (B, T)
        out = out + hk * w_out[:, k:k + 1]
    o_ref[...] = out.astype(o_ref.dtype)             # single lane-dense store


def nni_seq_forward(x, params, hidden=2):
    """x: (B, T, 1), batch_first like PyTorch. Returns (B, T, 1)."""
    B, T, _ = x.shape
    x2d = x[..., 0].astype(jnp.float32)              # (B, T) — squeeze feature dim
    slab = pack_params(params, hidden)               # single (8, 128) param DMA

    vmem = pl.BlockSpec(memory_space=pltpu.MemorySpace.VMEM)
    out2d = pl.pallas_call(
        functools.partial(nni_seq_kernel, hidden=hidden),
        out_shape=jax.ShapeDtypeStruct((B, T), jnp.float32),
        in_specs=[vmem, vmem],
        out_specs=vmem,
    )(x2d, slab)
    return out2d[..., None].astype(x.dtype)          # (B, T, 1)


def make_params(key, hidden=2):
    """Deterministic parameter init with shapes matching the PyTorch module."""
    ks = jax.random.split(key, 8)
    H = hidden
    # to_in: nn.Linear(1, 2) -> weight (2,1), bias (2,)   (stored transposed)
    w_in_t = jax.random.normal(ks[0], (1, H), jnp.float32) * 0.5
    b_in = jax.random.normal(ks[1], (1, H), jnp.float32) * 0.1
    # lstm: weight_ih (4H, 2), weight_hh (4H, 2), b_ih (4H,), b_hh (4H,)  (transposed)
    w_ih_t = jax.random.normal(ks[2], (H, 4 * H), jnp.float32) * 0.5
    w_hh_t = jax.random.normal(ks[3], (H, 4 * H), jnp.float32) * 0.5
    b_ih = jax.random.normal(ks[4], (1, 4 * H), jnp.float32) * 0.1
    b_hh = jax.random.normal(ks[5], (1, 4 * H), jnp.float32) * 0.1
    # to_out: nn.Linear(2, 1) -> weight (1,2), bias (1,)   (stored transposed)
    w_out_t = jax.random.normal(ks[6], (H, 1), jnp.float32) * 0.5
    b_out = jax.random.normal(ks[7], (1, 1), jnp.float32) * 0.1
    return {
        "w_in": w_in_t, "b_in": b_in,
        "w_ih": w_ih_t, "w_hh": w_hh_t, "b_g": b_ih + b_hh,
        "w_out": w_out_t, "b_out": b_out,
    }


def reference_forward(x, p):
    """Pure-JAX reference reproducing PyTorch semantics, for correctness check."""
    B, T, _ = x.shape
    H = p["w_hh"].shape[0]
    xin = x @ p["w_in"] + p["b_in"]                  # (B, T, H)
    h = jnp.zeros((B, H), jnp.float32)
    c = jnp.zeros((B, H), jnp.float32)
    outs = []
    for t in range(T):
        gates = xin[:, t, :] @ p["w_ih"] + h @ p["w_hh"] + p["b_g"]
        i_g = jax.nn.sigmoid(gates[:, 0 * H:1 * H])
        f_g = jax.nn.sigmoid(gates[:, 1 * H:2 * H])
        g_g = jnp.tanh(gates[:, 2 * H:3 * H])
        o_g = jax.nn.sigmoid(gates[:, 3 * H:4 * H])
        c = f_g * c + i_g * g_g
        h = o_g * jnp.tanh(c)
        outs.append(h @ p["w_out"] + p["b_out"])
    return jnp.stack(outs, axis=1)                   # (B, T, 1)


if __name__ == "__main__":
    key = jax.random.PRNGKey(0)
    k_x, k_p = jax.random.split(key)

    B, T, H = 2, 8, 2
    x = jax.random.normal(k_x, (B, T, 1), jnp.float32)
    params = make_params(k_p, hidden=H)

    out = nni_seq_forward(x, params, hidden=H)
    out = jax.block_until_ready(out)

    ref = reference_forward(x, params)
    assert out.shape == (B, T, 1)
    assert jnp.allclose(out, ref, atol=1e-5, rtol=1e-5), "mismatch vs reference"

    print("KERNEL_OK")
</pallas_src>

<mosaic_0001>
module attributes {stable_mosaic.version = 11 : i64} {
  func.func @nni_seq_kernel(%arg0: memref<2x8xf32, #tpu.memory_space<vmem>>, %arg1: memref<8x128xf32, #tpu.memory_space<vmem>>, %arg2: memref<2x8xf32, #tpu.memory_space<vmem>>) attributes {dimension_semantics = [], scalar_prefetch = 0 : i64, scratch_operands = 0 : i64, tpu.core_type = #tpu.core_type<tc>} {
    %c0 = arith.constant 0 : index
    %c0_0 = arith.constant 0 : index
    %0 = vector.load %arg0[%c0, %c0_0] : memref<2x8xf32, #tpu.memory_space<vmem>>, vector<2x8xf32>
    %c0_1 = arith.constant 0 : index
    %c0_2 = arith.constant 0 : index
    %1 = vector.load %arg1[%c0_1, %c0_2] : memref<8x128xf32, #tpu.memory_space<vmem>>, vector<8x128xf32>
    %2 = vector.extract_strided_slice %1 {offsets = [0, 0], sizes = [1, 128], strides = [1, 1]} : vector<8x128xf32> to vector<1x128xf32>
    %3 = vector.extract_strided_slice %2 {offsets = [0, 0], sizes = [1, 2], strides = [1, 1]} : vector<1x128xf32> to vector<1x2xf32>
    %4 = vector.extract_strided_slice %2 {offsets = [0, 2], sizes = [1, 2], strides = [1, 1]} : vector<1x128xf32> to vector<1x2xf32>
    %5 = vector.extract_strided_slice %2 {offsets = [0, 4], sizes = [1, 8], strides = [1, 1]} : vector<1x128xf32> to vector<1x8xf32>
    %6 = vector.extract_strided_slice %2 {offsets = [0, 12], sizes = [1, 2], strides = [1, 1]} : vector<1x128xf32> to vector<1x2xf32>
    %7 = vector.extract_strided_slice %2 {offsets = [0, 14], sizes = [1, 1], strides = [1, 1]} : vector<1x128xf32> to vector<1x1xf32>
    %8 = vector.extract_strided_slice %1 {offsets = [1, 0], sizes = [2, 8], strides = [1, 1]} : vector<8x128xf32> to vector<2x8xf32>
    %9 = vector.extract_strided_slice %1 {offsets = [3, 0], sizes = [2, 8], strides = [1, 1]} : vector<8x128xf32> to vector<2x8xf32>
    %cst = arith.constant 1.000000e+00 : f32
    %10 = vector.broadcast %cst : f32 to vector<1x4xf32>
    %cst_3 = arith.constant 2.000000e+00 : f32
    %11 = vector.broadcast %cst_3 : f32 to vector<1x2xf32>
    %cst_4 = arith.constant 1.000000e+00 : f32
    %12 = vector.broadcast %cst_4 : f32 to vector<1x2xf32>
    %13 = tpu.concatenate %10, %11, %12 in 1 : vector<1x4xf32>, vector<1x2xf32>, vector<1x2xf32> -> vector<1x8xf32>
    %14 = vector.extract_strided_slice %0 {offsets = [0, 0], sizes = [2, 1], strides = [1, 1]} : vector<2x8xf32> to vector<2x1xf32>
    %15 = vector.broadcast %14 : vector<2x1xf32> to vector<2x2xf32>
    %16 = vector.broadcast %3 : vector<1x2xf32> to vector<2x2xf32>
    %17 = arith.mulf %15, %16 : vector<2x2xf32>
    %18 = vector.broadcast %4 : vector<1x2xf32> to vector<2x2xf32>
    %19 = arith.addf %17, %18 : vector<2x2xf32>
    %20 = vector.extract_strided_slice %19 {offsets = [0, 0], sizes = [2, 1], strides = [1, 1]} : vector<2x2xf32> to vector<2x1xf32>
    %21 = vector.extract_strided_slice %8 {offsets = [0, 0], sizes = [1, 8], strides = [1, 1]} : vector<2x8xf32> to vector<1x8xf32>
    %22 = vector.broadcast %20 : vector<2x1xf32> to vector<2x8xf32>
    %23 = vector.broadcast %21 : vector<1x8xf32> to vector<2x8xf32>
    %24 = arith.mulf %22, %23 : vector<2x8xf32>
    %25 = vector.broadcast %5 : vector<1x8xf32> to vector<2x8xf32>
    %26 = arith.addf %25, %24 : vector<2x8xf32>
    %27 = vector.extract_strided_slice %19 {offsets = [0, 1], sizes = [2, 1], strides = [1, 1]} : vector<2x2xf32> to vector<2x1xf32>
    %28 = vector.extract_strided_slice %8 {offsets = [1, 0], sizes = [1, 8], strides = [1, 1]} : vector<2x8xf32> to vector<1x8xf32>
    %29 = vector.broadcast %27 : vector<2x1xf32> to vector<2x8xf32>
    %30 = vector.broadcast %28 : vector<1x8xf32> to vector<2x8xf32>
    %31 = arith.mulf %29, %30 : vector<2x8xf32>
    %32 = arith.addf %26, %31 : vector<2x8xf32>
    %33 = vector.extract_strided_slice %0 {offsets = [0, 1], sizes = [2, 1], strides = [1, 1]} : vector<2x8xf32> to vector<2x1xf32>
    %34 = vector.broadcast %33 : vector<2x1xf32> to vector<2x2xf32>
    %35 = vector.broadcast %3 : vector<1x2xf32> to vector<2x2xf32>
    %36 = arith.mulf %34, %35 : vector<2x2xf32>
    %37 = vector.broadcast %4 : vector<1x2xf32> to vector<2x2xf32>
    %38 = arith.addf %36, %37 : vector<2x2xf32>
    %39 = vector.extract_strided_slice %38 {offsets = [0, 0], sizes = [2, 1], strides = [1, 1]} : vector<2x2xf32> to vector<2x1xf32>
    %40 = vector.extract_strided_slice %8 {offsets = [0, 0], sizes = [1, 8], strides = [1, 1]} : vector<2x8xf32> to vector<1x8xf32>
    %41 = vector.broadcast %39 : vector<2x1xf32> to vector<2x8xf32>
    %42 = vector.broadcast %40 : vector<1x8xf32> to vector<2x8xf32>
    %43 = arith.mulf %41, %42 : vector<2x8xf32>
    %44 = vector.broadcast %5 : vector<1x8xf32> to vector<2x8xf32>
    %45 = arith.addf %44, %43 : vector<2x8xf32>
    %46 = vector.extract_strided_slice %38 {offsets = [0, 1], sizes = [2, 1], strides = [1, 1]} : vector<2x2xf32> to vector<2x1xf32>
    %47 = vector.extract_strided_slice %8 {offsets = [1, 0], sizes = [1, 8], strides = [1, 1]} : vector<2x8xf32> to vector<1x8xf32>
    %48 = vector.broadcast %46 : vector<2x1xf32> to vector<2x8xf32>
    %49 = vector.broadcast %47 : vector<1x8xf32> to vector<2x8xf32>
    %50 = arith.mulf %48, %49 : vector<2x8xf32>
    %51 = arith.addf %45, %50 : vector<2x8xf32>
    %52 = vector.extract_strided_slice %0 {offsets = [0, 2], sizes = [2, 1], strides = [1, 1]} : vector<2x8xf32> to vector<2x1xf32>
    %53 = vector.broadcast %52 : vector<2x1xf32> to vector<2x2xf32>
    %54 = vector.broadcast %3 : vector<1x2xf32> to vector<2x2xf32>
    %55 = arith.mulf %53, %54 : vector<2x2xf32>
    %56 = vector.broadcast %4 : vector<1x2xf32> to vector<2x2xf32>
    %57 = arith.addf %55, %56 : vector<2x2xf32>
    %58 = vector.extract_strided_slice %57 {offsets = [0, 0], sizes = [2, 1], strides = [1, 1]} : vector<2x2xf32> to vector<2x1xf32>
    %59 = vector.extract_strided_slice %8 {offsets = [0, 0], sizes = [1, 8], strides = [1, 1]} : vector<2x8xf32> to vector<1x8xf32>
    %60 = vector.broadcast %58 : vector<2x1xf32> to vector<2x8xf32>
    %61 = vector.broadcast %59 : vector<1x8xf32> to vector<2x8xf32>
    %62 = arith.mulf %60, %61 : vector<2x8xf32>
    %63 = vector.broadcast %5 : vector<1x8xf32> to vector<2x8xf32>
    %64 = arith.addf %63, %62 : vector<2x8xf32>
    %65 = vector.extract_strided_slice %57 {offsets = [0, 1], sizes = [2, 1], strides = [1, 1]} : vector<2x2xf32> to vector<2x1xf32>
    %66 = vector.extract_strided_slice %8 {offsets = [1, 0], sizes = [1, 8], strides = [1, 1]} : vector<2x8xf32> to vector<1x8xf32>
    %67 = vector.broadcast %65 : vector<2x1xf32> to vector<2x8xf32>
    %68 = vector.broadcast %66 : vector<1x8xf32> to vector<2x8xf32>
    %69 = arith.mulf %67, %68 : vector<2x8xf32>
    %70 = arith.addf %64, %69 : vector<2x8xf32>
    %71 = vector.extract_strided_slice %0 {offsets = [0, 3], sizes = [2, 1], strides = [1, 1]} : vector<2x8xf32> to vector<2x1xf32>
    %72 = vector.broadcast %71 : vector<2x1xf32> to vector<2x2xf32>
    %73 = vector.broadcast %3 : vector<1x2xf32> to vector<2x2xf32>
    %74 = arith.mulf %72, %73 : vector<2x2xf32>
    %75 = vector.broadcast %4 : vector<1x2xf32> to vector<2x2xf32>
    %76 = arith.addf %74, %75 : vector<2x2xf32>
    %77 = vector.extract_strided_slice %76 {offsets = [0, 0], sizes = [2, 1], strides = [1, 1]} : vector<2x2xf32> to vector<2x1xf32>
    %78 = vector.extract_strided_slice %8 {offsets = [0, 0], sizes = [1, 8], strides = [1, 1]} : vector<2x8xf32> to vector<1x8xf32>
    %79 = vector.broadcast %77 : vector<2x1xf32> to vector<2x8xf32>
    %80 = vector.broadcast %78 : vector<1x8xf32> to vector<2x8xf32>
    %81 = arith.mulf %79, %80 : vector<2x8xf32>
    %82 = vector.broadcast %5 : vector<1x8xf32> to vector<2x8xf32>
    %83 = arith.addf %82, %81 : vector<2x8xf32>
    %84 = vector.extract_strided_slice %76 {offsets = [0, 1], sizes = [2, 1], strides = [1, 1]} : vector<2x2xf32> to vector<2x1xf32>
    %85 = vector.extract_strided_slice %8 {offsets = [1, 0], sizes = [1, 8], strides = [1, 1]} : vector<2x8xf32> to vector<1x8xf32>
    %86 = vector.broadcast %84 : vector<2x1xf32> to vector<2x8xf32>
    %87 = vector.broadcast %85 : vector<1x8xf32> to vector<2x8xf32>
    %88 = arith.mulf %86, %87 : vector<2x8xf32>
    %89 = arith.addf %83, %88 : vector<2x8xf32>
    %90 = vector.extract_strided_slice %0 {offsets = [0, 4], sizes = [2, 1], strides = [1, 1]} : vector<2x8xf32> to vector<2x1xf32>
    %91 = vector.broadcast %90 : vector<2x1xf32> to vector<2x2xf32>
    %92 = vector.broadcast %3 : vector<1x2xf32> to vector<2x2xf32>
    %93 = arith.mulf %91, %92 : vector<2x2xf32>
    %94 = vector.broadcast %4 : vector<1x2xf32> to vector<2x2xf32>
    %95 = arith.addf %93, %94 : vector<2x2xf32>
    %96 = vector.extract_strided_slice %95 {offsets = [0, 0], sizes = [2, 1], strides = [1, 1]} : vector<2x2xf32> to vector<2x1xf32>
    %97 = vector.extract_strided_slice %8 {offsets = [0, 0], sizes = [1, 8], strides = [1, 1]} : vector<2x8xf32> to vector<1x8xf32>
    %98 = vector.broadcast %96 : vector<2x1xf32> to vector<2x8xf32>
    %99 = vector.broadcast %97 : vector<1x8xf32> to vector<2x8xf32>
    %100 = arith.mulf %98, %99 : vector<2x8xf32>
    %101 = vector.broadcast %5 : vector<1x8xf32> to vector<2x8xf32>
    %102 = arith.addf %101, %100 : vector<2x8xf32>
    %103 = vector.extract_strided_slice %95 {offsets = [0, 1], sizes = [2, 1], strides = [1, 1]} : vector<2x2xf32> to vector<2x1xf32>
    %104 = vector.extract_strided_slice %8 {offsets = [1, 0], sizes = [1, 8], strides = [1, 1]} : vector<2x8xf32> to vector<1x8xf32>
    %105 = vector.broadcast %103 : vector<2x1xf32> to vector<2x8xf32>
    %106 = vector.broadcast %104 : vector<1x8xf32> to vector<2x8xf32>
    %107 = arith.mulf %105, %106 : vector<2x8xf32>
    %108 = arith.addf %102, %107 : vector<2x8xf32>
    %109 = vector.extract_strided_slice %0 {offsets = [0, 5], sizes = [2, 1], strides = [1, 1]} : vector<2x8xf32> to vector<2x1xf32>
    %110 = vector.broadcast %109 : vector<2x1xf32> to vector<2x2xf32>
    %111 = vector.broadcast %3 : vector<1x2xf32> to vector<2x2xf32>
    %112 = arith.mulf %110, %111 : vector<2x2xf32>
    %113 = vector.broadcast %4 : vector<1x2xf32> to vector<2x2xf32>
    %114 = arith.addf %112, %113 : vector<2x2xf32>
    %115 = vector.extract_strided_slice %114 {offsets = [0, 0], sizes = [2, 1], strides = [1, 1]} : vector<2x2xf32> to vector<2x1xf32>
    %116 = vector.extract_strided_slice %8 {offsets = [0, 0], sizes = [1, 8], strides = [1, 1]} : vector<2x8xf32> to vector<1x8xf32>
    %117 = vector.broadcast %115 : vector<2x1xf32> to vector<2x8xf32>
    %118 = vector.broadcast %116 : vector<1x8xf32> to vector<2x8xf32>
    %119 = arith.mulf %117, %118 : vector<2x8xf32>
    %120 = vector.broadcast %5 : vector<1x8xf32> to vector<2x8xf32>
    %121 = arith.addf %120, %119 : vector<2x8xf32>
    %122 = vector.extract_strided_slice %114 {offsets = [0, 1], sizes = [2, 1], strides = [1, 1]} : vector<2x2xf32> to vector<2x1xf32>
    %123 = vector.extract_strided_slice %8 {offsets = [1, 0], sizes = [1, 8], strides = [1, 1]} : vector<2x8xf32> to vector<1x8xf32>
    %124 = vector.broadcast %122 : vector<2x1xf32> to vector<2x8xf32>
    %125 = vector.broadcast %123 : vector<1x8xf32> to vector<2x8xf32>
    %126 = arith.mulf %124, %125 : vector<2x8xf32>
    %127 = arith.addf %121, %126 : vector<2x8xf32>
    %128 = vector.extract_strided_slice %0 {offsets = [0, 6], sizes = [2, 1], strides = [1, 1]} : vector<2x8xf32> to vector<2x1xf32>
    %129 = vector.broadcast %128 : vector<2x1xf32> to vector<2x2xf32>
    %130 = vector.broadcast %3 : vector<1x2xf32> to vector<2x2xf32>
    %131 = arith.mulf %129, %130 : vector<2x2xf32>
    %132 = vector.broadcast %4 : vector<1x2xf32> to vector<2x2xf32>
    %133 = arith.addf %131, %132 : vector<2x2xf32>
    %134 = vector.extract_strided_slice %133 {offsets = [0, 0], sizes = [2, 1], strides = [1, 1]} : vector<2x2xf32> to vector<2x1xf32>
    %135 = vector.extract_strided_slice %8 {offsets = [0, 0], sizes = [1, 8], strides = [1, 1]} : vector<2x8xf32> to vector<1x8xf32>
    %136 = vector.broadcast %134 : vector<2x1xf32> to vector<2x8xf32>
    %137 = vector.broadcast %135 : vector<1x8xf32> to vector<2x8xf32>
    %138 = arith.mulf %136, %137 : vector<2x8xf32>
    %139 = vector.broadcast %5 : vector<1x8xf32> to vector<2x8xf32>
    %140 = arith.addf %139, %138 : vector<2x8xf32>
    %141 = vector.extract_strided_slice %133 {offsets = [0, 1], sizes = [2, 1], strides = [1, 1]} : vector<2x2xf32> to vector<2x1xf32>
    %142 = vector.extract_strided_slice %8 {offsets = [1, 0], sizes = [1, 8], strides = [1, 1]} : vector<2x8xf32> to vector<1x8xf32>
    %143 = vector.broadcast %141 : vector<2x1xf32> to vector<2x8xf32>
    %144 = vector.broadcast %142 : vector<1x8xf32> to vector<2x8xf32>
    %145 = arith.mulf %143, %144 : vector<2x8xf32>
    %146 = arith.addf %140, %145 : vector<2x8xf32>
    %147 = vector.extract_strided_slice %0 {offsets = [0, 7], sizes = [2, 1], strides = [1, 1]} : vector<2x8xf32> to vector<2x1xf32>
    %148 = vector.broadcast %147 : vector<2x1xf32> to vector<2x2xf32>
    %149 = vector.broadcast %3 : vector<1x2xf32> to vector<2x2xf32>
    %150 = arith.mulf %148, %149 : vector<2x2xf32>
    %151 = vector.broadcast %4 : vector<1x2xf32> to vector<2x2xf32>
    %152 = arith.addf %150, %151 : vector<2x2xf32>
    %153 = vector.extract_strided_slice %152 {offsets = [0, 0], sizes = [2, 1], strides = [1, 1]} : vector<2x2xf32> to vector<2x1xf32>
    %154 = vector.extract_strided_slice %8 {offsets = [0, 0], sizes = [1, 8], strides = [1, 1]} : vector<2x8xf32> to vector<1x8xf32>
    %155 = vector.broadcast %153 : vector<2x1xf32> to vector<2x8xf32>
    %156 = vector.broadcast %154 : vector<1x8xf32> to vector<2x8xf32>
    %157 = arith.mulf %155, %156 : vector<2x8xf32>
    %158 = vector.broadcast %5 : vector<1x8xf32> to vector<2x8xf32>
    %159 = arith.addf %158, %157 : vector<2x8xf32>
    %160 = vector.extract_strided_slice %152 {offsets = [0, 1], sizes = [2, 1], strides = [1, 1]} : vector<2x2xf32> to vector<2x1xf32>
    %161 = vector.extract_strided_slice %8 {offsets = [1, 0], sizes = [1, 8], strides = [1, 1]} : vector<2x8xf32> to vector<1x8xf32>
    %162 = vector.broadcast %160 : vector<2x1xf32> to vector<2x8xf32>
    %163 = vector.broadcast %161 : vector<1x8xf32> to vector<2x8xf32>
    %164 = arith.mulf %162, %163 : vector<2x8xf32>
    %165 = arith.addf %159, %164 : vector<2x8xf32>
    %cst_5 = arith.constant 0.000000e+00 : f32
    %166 = vector.broadcast %cst_5 : f32 to vector<2x2xf32>
    %cst_6 = arith.constant 0.000000e+00 : f32
    %167 = vector.broadcast %cst_6 : f32 to vector<2x2xf32>
    %168 = vector.extract_strided_slice %166 {offsets = [0, 0], sizes = [2, 1], strides = [1, 1]} : vector<2x2xf32> to vector<2x1xf32>
    %169 = vector.extract_strided_slice %9 {offsets = [0, 0], sizes = [1, 8], strides = [1, 1]} : vector<2x8xf32> to vector<1x8xf32>
    %170 = vector.broadcast %168 : vector<2x1xf32> to vector<2x8xf32>
    %171 = vector.broadcast %169 : vector<1x8xf32> to vector<2x8xf32>
    %172 = arith.mulf %170, %171 : vector<2x8xf32>
    %173 = arith.addf %32, %172 : vector<2x8xf32>
    %174 = vector.extract_strided_slice %166 {offsets = [0, 1], sizes = [2, 1], strides = [1, 1]} : vector<2x2xf32> to vector<2x1xf32>
    %175 = vector.extract_strided_slice %9 {offsets = [1, 0], sizes = [1, 8], strides = [1, 1]} : vector<2x8xf32> to vector<1x8xf32>
    %176 = vector.broadcast %174 : vector<2x1xf32> to vector<2x8xf32>
    %177 = vector.broadcast %175 : vector<1x8xf32> to vector<2x8xf32>
    %178 = arith.mulf %176, %177 : vector<2x8xf32>
    %179 = arith.addf %173, %178 : vector<2x8xf32>
    %180 = vector.broadcast %13 : vector<1x8xf32> to vector<2x8xf32>
    %181 = arith.mulf %179, %180 : vector<2x8xf32>
    %182 = arith.negf %181 : vector<2x8xf32>
    %183 = math.exp %182 : vector<2x8xf32>
    %cst_7 = arith.constant 1.000000e+00 : f32
    %184 = vector.broadcast %cst_7 : f32 to vector<2x8xf32>
    %185 = arith.addf %184, %183 : vector<2x8xf32>
    %186 = arith.divf %184, %185 : vector<2x8xf32>
    %187 = vector.extract_strided_slice %186 {offsets = [0, 0], sizes = [2, 2], strides = [1, 1]} : vector<2x8xf32> to vector<2x2xf32>
    %188 = vector.extract_strided_slice %186 {offsets = [0, 2], sizes = [2, 2], strides = [1, 1]} : vector<2x8xf32> to vector<2x2xf32>
    %189 = vector.extract_strided_slice %186 {offsets = [0, 4], sizes = [2, 2], strides = [1, 1]} : vector<2x8xf32> to vector<2x2xf32>
    %cst_8 = arith.constant 2.000000e+00 : f32
    %190 = vector.broadcast %cst_8 : f32 to vector<2x2xf32>
    %191 = arith.mulf %190, %189 : vector<2x2xf32>
    %cst_9 = arith.constant 1.000000e+00 : f32
    %192 = vector.broadcast %cst_9 : f32 to vector<2x2xf32>
    %193 = arith.subf %191, %192 : vector<2x2xf32>
    %194 = vector.extract_strided_slice %186 {offsets = [0, 6], sizes = [2, 2], strides = [1, 1]} : vector<2x8xf32> to vector<2x2xf32>
    %195 = arith.mulf %188, %167 : vector<2x2xf32>
    %196 = arith.mulf %187, %193 : vector<2x2xf32>
    %197 = arith.addf %195, %196 : vector<2x2xf32>
    %198 = math.tanh %197 : vector<2x2xf32>
    %199 = arith.mulf %194, %198 : vector<2x2xf32>
    %200 = vector.extract_strided_slice %199 {offsets = [0, 0], sizes = [2, 1], strides = [1, 1]} : vector<2x2xf32> to vector<2x1xf32>
    %201 = vector.extract_strided_slice %9 {offsets = [0, 0], sizes = [1, 8], strides = [1, 1]} : vector<2x8xf32> to vector<1x8xf32>
    %202 = vector.broadcast %200 : vector<2x1xf32> to vector<2x8xf32>
    %203 = vector.broadcast %201 : vector<1x8xf32> to vector<2x8xf32>
    %204 = arith.mulf %202, %203 : vector<2x8xf32>
    %205 = arith.addf %51, %204 : vector<2x8xf32>
    %206 = vector.extract_strided_slice %199 {offsets = [0, 1], sizes = [2, 1], strides = [1, 1]} : vector<2x2xf32> to vector<2x1xf32>
    %207 = vector.extract_strided_slice %9 {offsets = [1, 0], sizes = [1, 8], strides = [1, 1]} : vector<2x8xf32> to vector<1x8xf32>
    %208 = vector.broadcast %206 : vector<2x1xf32> to vector<2x8xf32>
    %209 = vector.broadcast %207 : vector<1x8xf32> to vector<2x8xf32>
    %210 = arith.mulf %208, %209 : vector<2x8xf32>
    %211 = arith.addf %205, %210 : vector<2x8xf32>
    %212 = vector.broadcast %13 : vector<1x8xf32> to vector<2x8xf32>
    %213 = arith.mulf %211, %212 : vector<2x8xf32>
    %214 = arith.negf %213 : vector<2x8xf32>
    %215 = math.exp %214 : vector<2x8xf32>
    %cst_10 = arith.constant 1.000000e+00 : f32
    %216 = vector.broadcast %cst_10 : f32 to vector<2x8xf32>
    %217 = arith.addf %216, %215 : vector<2x8xf32>
    %218 = arith.divf %216, %217 : vector<2x8xf32>
    %219 = vector.extract_strided_slice %218 {offsets = [0, 0], sizes = [2, 2], strides = [1, 1]} : vector<2x8xf32> to vector<2x2xf32>
    %220 = vector.extract_strided_slice %218 {offsets = [0, 2], sizes = [2, 2], strides = [1, 1]} : vector<2x8xf32> to vector<2x2xf32>
    %221 = vector.extract_strided_slice %218 {offsets = [0, 4], sizes = [2, 2], strides = [1, 1]} : vector<2x8xf32> to vector<2x2xf32>
    %cst_11 = arith.constant 2.000000e+00 : f32
    %222 = vector.broadcast %cst_11 : f32 to vector<2x2xf32>
    %223 = arith.mulf %222, %221 : vector<2x2xf32>
    %cst_12 = arith.constant 1.000000e+00 : f32
    %224 = vector.broadcast %cst_12 : f32 to vector<2x2xf32>
    %225 = arith.subf %223, %224 : vector<2x2xf32>
    %226 = vector.extract_strided_slice %218 {offsets = [0, 6], sizes = [2, 2], strides = [1, 1]} : vector<2x8xf32> to vector<2x2xf32>
    %227 = arith.mulf %220, %197 : vector<2x2xf32>
    %228 = arith.mulf %219, %225 : vector<2x2xf32>
    %229 = arith.addf %227, %228 : vector<2x2xf32>
    %230 = math.tanh %229 : vector<2x2xf32>
    %231 = arith.mulf %226, %230 : vector<2x2xf32>
    %232 = vector.extract_strided_slice %231 {offsets = [0, 0], sizes = [2, 1], strides = [1, 1]} : vector<2x2xf32> to vector<2x1xf32>
    %233 = vector.extract_strided_slice %9 {offsets = [0, 0], sizes = [1, 8], strides = [1, 1]} : vector<2x8xf32> to vector<1x8xf32>
    %234 = vector.broadcast %232 : vector<2x1xf32> to vector<2x8xf32>
    %235 = vector.broadcast %233 : vector<1x8xf32> to vector<2x8xf32>
    %236 = arith.mulf %234, %235 : vector<2x8xf32>
    %237 = arith.addf %70, %236 : vector<2x8xf32>
    %238 = vector.extract_strided_slice %231 {offsets = [0, 1], sizes = [2, 1], strides = [1, 1]} : vector<2x2xf32> to vector<2x1xf32>
    %239 = vector.extract_strided_slice %9 {offsets = [1, 0], sizes = [1, 8], strides = [1, 1]} : vector<2x8xf32> to vector<1x8xf32>
    %240 = vector.broadcast %238 : vector<2x1xf32> to vector<2x8xf32>
    %241 = vector.broadcast %239 : vector<1x8xf32> to vector<2x8xf32>
    %242 = arith.mulf %240, %241 : vector<2x8xf32>
    %243 = arith.addf %237, %242 : vector<2x8xf32>
    %244 = vector.broadcast %13 : vector<1x8xf32> to vector<2x8xf32>
    %245 = arith.mulf %243, %244 : vector<2x8xf32>
    %246 = arith.negf %245 : vector<2x8xf32>
    %247 = math.exp %246 : vector<2x8xf32>
    %cst_13 = arith.constant 1.000000e+00 : f32
    %248 = vector.broadcast %cst_13 : f32 to vector<2x8xf32>
    %249 = arith.addf %248, %247 : vector<2x8xf32>
    %250 = arith.divf %248, %249 : vector<2x8xf32>
    %251 = vector.extract_strided_slice %250 {offsets = [0, 0], sizes = [2, 2], strides = [1, 1]} : vector<2x8xf32> to vector<2x2xf32>
    %252 = vector.extract_strided_slice %250 {offsets = [0, 2], sizes = [2, 2], strides = [1, 1]} : vector<2x8xf32> to vector<2x2xf32>
    %253 = vector.extract_strided_slice %250 {offsets = [0, 4], sizes = [2, 2], strides = [1, 1]} : vector<2x8xf32> to vector<2x2xf32>
    %cst_14 = arith.constant 2.000000e+00 : f32
    %254 = vector.broadcast %cst_14 : f32 to vector<2x2xf32>
    %255 = arith.mulf %254, %253 : vector<2x2xf32>
    %cst_15 = arith.constant 1.000000e+00 : f32
    %256 = vector.broadcast %cst_15 : f32 to vector<2x2xf32>
    %257 = arith.subf %255, %256 : vector<2x2xf32>
    %258 = vector.extract_strided_slice %250 {offsets = [0, 6], sizes = [2, 2], strides = [1, 1]} : vector<2x8xf32> to vector<2x2xf32>
    %259 = arith.mulf %252, %229 : vector<2x2xf32>
    %260 = arith.mulf %251, %257 : vector<2x2xf32>
    %261 = arith.addf %259, %260 : vector<2x2xf32>
    %262 = math.tanh %261 : vector<2x2xf32>
    %263 = arith.mulf %258, %262 : vector<2x2xf32>
    %264 = vector.extract_strided_slice %263 {offsets = [0, 0], sizes = [2, 1], strides = [1, 1]} : vector<2x2xf32> to vector<2x1xf32>
    %265 = vector.extract_strided_slice %9 {offsets = [0, 0], sizes = [1, 8], strides = [1, 1]} : vector<2x8xf32> to vector<1x8xf32>
    %266 = vector.broadcast %264 : vector<2x1xf32> to vector<2x8xf32>
    %267 = vector.broadcast %265 : vector<1x8xf32> to vector<2x8xf32>
    %268 = arith.mulf %266, %267 : vector<2x8xf32>
    %269 = arith.addf %89, %268 : vector<2x8xf32>
    %270 = vector.extract_strided_slice %263 {offsets = [0, 1], sizes = [2, 1], strides = [1, 1]} : vector<2x2xf32> to vector<2x1xf32>
    %271 = vector.extract_strided_slice %9 {offsets = [1, 0], sizes = [1, 8], strides = [1, 1]} : vector<2x8xf32> to vector<1x8xf32>
    %272 = vector.broadcast %270 : vector<2x1xf32> to vector<2x8xf32>
    %273 = vector.broadcast %271 : vector<1x8xf32> to vector<2x8xf32>
    %274 = arith.mulf %272, %273 : vector<2x8xf32>
    %275 = arith.addf %269, %274 : vector<2x8xf32>
    %276 = vector.broadcast %13 : vector<1x8xf32> to vector<2x8xf32>
    %277 = arith.mulf %275, %276 : vector<2x8xf32>
    %278 = arith.negf %277 : vector<2x8xf32>
    %279 = math.exp %278 : vector<2x8xf32>
    %cst_16 = arith.constant 1.000000e+00 : f32
    %280 = vector.broadcast %cst_16 : f32 to vector<2x8xf32>
    %281 = arith.addf %280, %279 : vector<2x8xf32>
    %282 = arith.divf %280, %281 : vector<2x8xf32>
    %283 = vector.extract_strided_slice %282 {offsets = [0, 0], sizes = [2, 2], strides = [1, 1]} : vector<2x8xf32> to vector<2x2xf32>
    %284 = vector.extract_strided_slice %282 {offsets = [0, 2], sizes = [2, 2], strides = [1, 1]} : vector<2x8xf32> to vector<2x2xf32>
    %285 = vector.extract_strided_slice %282 {offsets = [0, 4], sizes = [2, 2], strides = [1, 1]} : vector<2x8xf32> to vector<2x2xf32>
    %cst_17 = arith.constant 2.000000e+00 : f32
    %286 = vector.broadcast %cst_17 : f32 to vector<2x2xf32>
    %287 = arith.mulf %286, %285 : vector<2x2xf32>
    %cst_18 = arith.constant 1.000000e+00 : f32
    %288 = vector.broadcast %cst_18 : f32 to vector<2x2xf32>
    %289 = arith.subf %287, %288 : vector<2x2xf32>
    %290 = vector.extract_strided_slice %282 {offsets = [0, 6], sizes = [2, 2], strides = [1, 1]} : vector<2x8xf32> to vector<2x2xf32>
    %291 = arith.mulf %284, %261 : vector<2x2xf32>
    %292 = arith.mulf %283, %289 : vector<2x2xf32>
    %293 = arith.addf %291, %292 : vector<2x2xf32>
    %294 = math.tanh %293 : vector<2x2xf32>
    %295 = arith.mulf %290, %294 : vector<2x2xf32>
    %296 = vector.extract_strided_slice %295 {offsets = [0, 0], sizes = [2, 1], strides = [1, 1]} : vector<2x2xf32> to vector<2x1xf32>
    %297 = vector.extract_strided_slice %9 {offsets = [0, 0], sizes = [1, 8], strides = [1, 1]} : vector<2x8xf32> to vector<1x8xf32>
    %298 = vector.broadcast %296 : vector<2x1xf32> to vector<2x8xf32>
    %299 = vector.broadcast %297 : vector<1x8xf32> to vector<2x8xf32>
    %300 = arith.mulf %298, %299 : vector<2x8xf32>
    %301 = arith.addf %108, %300 : vector<2x8xf32>
    %302 = vector.extract_strided_slice %295 {offsets = [0, 1], sizes = [2, 1], strides = [1, 1]} : vector<2x2xf32> to vector<2x1xf32>
    %303 = vector.extract_strided_slice %9 {offsets = [1, 0], sizes = [1, 8], strides = [1, 1]} : vector<2x8xf32> to vector<1x8xf32>
    %304 = vector.broadcast %302 : vector<2x1xf32> to vector<2x8xf32>
    %305 = vector.broadcast %303 : vector<1x8xf32> to vector<2x8xf32>
    %306 = arith.mulf %304, %305 : vector<2x8xf32>
    %307 = arith.addf %301, %306 : vector<2x8xf32>
    %308 = vector.broadcast %13 : vector<1x8xf32> to vector<2x8xf32>
    %309 = arith.mulf %307, %308 : vector<2x8xf32>
    %310 = arith.negf %309 : vector<2x8xf32>
    %311 = math.exp %310 : vector<2x8xf32>
    %cst_19 = arith.constant 1.000000e+00 : f32
    %312 = vector.broadcast %cst_19 : f32 to vector<2x8xf32>
    %313 = arith.addf %312, %311 : vector<2x8xf32>
    %314 = arith.divf %312, %313 : vector<2x8xf32>
    %315 = vector.extract_strided_slice %314 {offsets = [0, 0], sizes = [2, 2], strides = [1, 1]} : vector<2x8xf32> to vector<2x2xf32>
    %316 = vector.extract_strided_slice %314 {offsets = [0, 2], sizes = [2, 2], strides = [1, 1]} : vector<2x8xf32> to vector<2x2xf32>
    %317 = vector.extract_strided_slice %314 {offsets = [0, 4], sizes = [2, 2], strides = [1, 1]} : vector<2x8xf32> to vector<2x2xf32>
    %cst_20 = arith.constant 2.000000e+00 : f32
    %318 = vector.broadcast %cst_20 : f32 to vector<2x2xf32>
    %319 = arith.mulf %318, %317 : vector<2x2xf32>
    %cst_21 = arith.constant 1.000000e+00 : f32
    %320 = vector.broadcast %cst_21 : f32 to vector<2x2xf32>
    %321 = arith.subf %319, %320 : vector<2x2xf32>
    %322 = vector.extract_strided_slice %314 {offsets = [0, 6], sizes = [2, 2], strides = [1, 1]} : vector<2x8xf32> to vector<2x2xf32>
    %323 = arith.mulf %316, %293 : vector<2x2xf32>
    %324 = arith.mulf %315, %321 : vector<2x2xf32>
    %325 = arith.addf %323, %324 : vector<2x2xf32>
    %326 = math.tanh %325 : vector<2x2xf32>
    %327 = arith.mulf %322, %326 : vector<2x2xf32>
    %328 = vector.extract_strided_slice %327 {offsets = [0, 0], sizes = [2, 1], strides = [1, 1]} : vector<2x2xf32> to vector<2x1xf32>
    %329 = vector.extract_strided_slice %9 {offsets = [0, 0], sizes = [1, 8], strides = [1, 1]} : vector<2x8xf32> to vector<1x8xf32>
    %330 = vector.broadcast %328 : vector<2x1xf32> to vector<2x8xf32>
    %331 = vector.broadcast %329 : vector<1x8xf32> to vector<2x8xf32>
    %332 = arith.mulf %330, %331 : vector<2x8xf32>
    %333 = arith.addf %127, %332 : vector<2x8xf32>
    %334 = vector.extract_strided_slice %327 {offsets = [0, 1], sizes = [2, 1], strides = [1, 1]} : vector<2x2xf32> to vector<2x1xf32>
    %335 = vector.extract_strided_slice %9 {offsets = [1, 0], sizes = [1, 8], strides = [1, 1]} : vector<2x8xf32> to vector<1x8xf32>
    %336 = vector.broadcast %334 : vector<2x1xf32> to vector<2x8xf32>
    %337 = vector.broadcast %335 : vector<1x8xf32> to vector<2x8xf32>
    %338 = arith.mulf %336, %337 : vector<2x8xf32>
    %339 = arith.addf %333, %338 : vector<2x8xf32>
    %340 = vector.broadcast %13 : vector<1x8xf32> to vector<2x8xf32>
    %341 = arith.mulf %339, %340 : vector<2x8xf32>
    %342 = arith.negf %341 : vector<2x8xf32>
    %343 = math.exp %342 : vector<2x8xf32>
    %cst_22 = arith.constant 1.000000e+00 : f32
    %344 = vector.broadcast %cst_22 : f32 to vector<2x8xf32>
    %345 = arith.addf %344, %343 : vector<2x8xf32>
    %346 = arith.divf %344, %345 : vector<2x8xf32>
    %347 = vector.extract_strided_slice %346 {offsets = [0, 0], sizes = [2, 2], strides = [1, 1]} : vector<2x8xf32> to vector<2x2xf32>
    %348 = vector.extract_strided_slice %346 {offsets = [0, 2], sizes = [2, 2], strides = [1, 1]} : vector<2x8xf32> to vector<2x2xf32>
    %349 = vector.extract_strided_slice %346 {offsets = [0, 4], sizes = [2, 2], strides = [1, 1]} : vector<2x8xf32> to vector<2x2xf32>
    %cst_23 = arith.constant 2.000000e+00 : f32
    %350 = vector.broadcast %cst_23 : f32 to vector<2x2xf32>
    %351 = arith.mulf %350, %349 : vector<2x2xf32>
    %cst_24 = arith.constant 1.000000e+00 : f32
    %352 = vector.broadcast %cst_24 : f32 to vector<2x2xf32>
    %353 = arith.subf %351, %352 : vector<2x2xf32>
    %354 = vector.extract_strided_slice %346 {offsets = [0, 6], sizes = [2, 2], strides = [1, 1]} : vector<2x8xf32> to vector<2x2xf32>
    %355 = arith.mulf %348, %325 : vector<2x2xf32>
    %356 = arith.mulf %347, %353 : vector<2x2xf32>
    %357 = arith.addf %355, %356 : vector<2x2xf32>
    %358 = math.tanh %357 : vector<2x2xf32>
    %359 = arith.mulf %354, %358 : vector<2x2xf32>
    %360 = vector.extract_strided_slice %359 {offsets = [0, 0], sizes = [2, 1], strides = [1, 1]} : vector<2x2xf32> to vector<2x1xf32>
    %361 = vector.extract_strided_slice %9 {offsets = [0, 0], sizes = [1, 8], strides = [1, 1]} : vector<2x8xf32> to vector<1x8xf32>
    %362 = vector.broadcast %360 : vector<2x1xf32> to vector<2x8xf32>
    %363 = vector.broadcast %361 : vector<1x8xf32> to vector<2x8xf32>
    %364 = arith.mulf %362, %363 : vector<2x8xf32>
    %365 = arith.addf %146, %364 : vector<2x8xf32>
    %366 = vector.extract_strided_slice %359 {offsets = [0, 1], sizes = [2, 1], strides = [1, 1]} : vector<2x2xf32> to vector<2x1xf32>
    %367 = vector.extract_strided_slice %9 {offsets = [1, 0], sizes = [1, 8], strides = [1, 1]} : vector<2x8xf32> to vector<1x8xf32>
    %368 = vector.broadcast %366 : vector<2x1xf32> to vector<2x8xf32>
    %369 = vector.broadcast %367 : vector<1x8xf32> to vector<2x8xf32>
    %370 = arith.mulf %368, %369 : vector<2x8xf32>
    %371 = arith.addf %365, %370 : vector<2x8xf32>
    %372 = vector.broadcast %13 : vector<1x8xf32> to vector<2x8xf32>
    %373 = arith.mulf %371, %372 : vector<2x8xf32>
    %374 = arith.negf %373 : vector<2x8xf32>
    %375 = math.exp %374 : vector<2x8xf32>
    %cst_25 = arith.constant 1.000000e+00 : f32
    %376 = vector.broadcast %cst_25 : f32 to vector<2x8xf32>
    %377 = arith.addf %376, %375 : vector<2x8xf32>
    %378 = arith.divf %376, %377 : vector<2x8xf32>
    %379 = vector.extract_strided_slice %378 {offsets = [0, 0], sizes = [2, 2], strides = [1, 1]} : vector<2x8xf32> to vector<2x2xf32>
    %380 = vector.extract_strided_slice %378 {offsets = [0, 2], sizes = [2, 2], strides = [1, 1]} : vector<2x8xf32> to vector<2x2xf32>
    %381 = vector.extract_strided_slice %378 {offsets = [0, 4], sizes = [2, 2], strides = [1, 1]} : vector<2x8xf32> to vector<2x2xf32>
    %cst_26 = arith.constant 2.000000e+00 : f32
    %382 = vector.broadcast %cst_26 : f32 to vector<2x2xf32>
    %383 = arith.mulf %382, %381 : vector<2x2xf32>
    %cst_27 = arith.constant 1.000000e+00 : f32
    %384 = vector.broadcast %cst_27 : f32 to vector<2x2xf32>
    %385 = arith.subf %383, %384 : vector<2x2xf32>
    %386 = vector.extract_strided_slice %378 {offsets = [0, 6], sizes = [2, 2], strides = [1, 1]} : vector<2x8xf32> to vector<2x2xf32>
    %387 = arith.mulf %380, %357 : vector<2x2xf32>
    %388 = arith.mulf %379, %385 : vector<2x2xf32>
    %389 = arith.addf %387, %388 : vector<2x2xf32>
    %390 = math.tanh %389 : vector<2x2xf32>
    %391 = arith.mulf %386, %390 : vector<2x2xf32>
    %392 = vector.extract_strided_slice %391 {offsets = [0, 0], sizes = [2, 1], strides = [1, 1]} : vector<2x2xf32> to vector<2x1xf32>
    %393 = vector.extract_strided_slice %9 {offsets = [0, 0], sizes = [1, 8], strides = [1, 1]} : vector<2x8xf32> to vector<1x8xf32>
    %394 = vector.broadcast %392 : vector<2x1xf32> to vector<2x8xf32>
    %395 = vector.broadcast %393 : vector<1x8xf32> to vector<2x8xf32>
    %396 = arith.mulf %394, %395 : vector<2x8xf32>
    %397 = arith.addf %165, %396 : vector<2x8xf32>
    %398 = vector.extract_strided_slice %391 {offsets = [0, 1], sizes = [2, 1], strides = [1, 1]} : vector<2x2xf32> to vector<2x1xf32>
    %399 = vector.extract_strided_slice %9 {offsets = [1, 0], sizes = [1, 8], strides = [1, 1]} : vector<2x8xf32> to vector<1x8xf32>
    %400 = vector.broadcast %398 : vector<2x1xf32> to vector<2x8xf32>
    %401 = vector.broadcast %399 : vector<1x8xf32> to vector<2x8xf32>
    %402 = arith.mulf %400, %401 : vector<2x8xf32>
    %403 = arith.addf %397, %402 : vector<2x8xf32>
    %404 = vector.broadcast %13 : vector<1x8xf32> to vector<2x8xf32>
    %405 = arith.mulf %403, %404 : vector<2x8xf32>
    %406 = arith.negf %405 : vector<2x8xf32>
    %407 = math.exp %406 : vector<2x8xf32>
    %cst_28 = arith.constant 1.000000e+00 : f32
    %408 = vector.broadcast %cst_28 : f32 to vector<2x8xf32>
    %409 = arith.addf %408, %407 : vector<2x8xf32>
    %410 = arith.divf %408, %409 : vector<2x8xf32>
    %411 = vector.extract_strided_slice %410 {offsets = [0, 0], sizes = [2, 2], strides = [1, 1]} : vector<2x8xf32> to vector<2x2xf32>
    %412 = vector.extract_strided_slice %410 {offsets = [0, 2], sizes = [2, 2], strides = [1, 1]} : vector<2x8xf32> to vector<2x2xf32>
    %413 = vector.extract_strided_slice %410 {offsets = [0, 4], sizes = [2, 2], strides = [1, 1]} : vector<2x8xf32> to vector<2x2xf32>
    %cst_29 = arith.constant 2.000000e+00 : f32
    %414 = vector.broadcast %cst_29 : f32 to vector<2x2xf32>
    %415 = arith.mulf %414, %413 : vector<2x2xf32>
    %cst_30 = arith.constant 1.000000e+00 : f32
    %416 = vector.broadcast %cst_30 : f32 to vector<2x2xf32>
    %417 = arith.subf %415, %416 : vector<2x2xf32>
    %418 = vector.extract_strided_slice %410 {offsets = [0, 6], sizes = [2, 2], strides = [1, 1]} : vector<2x8xf32> to vector<2x2xf32>
    %419 = arith.mulf %412, %389 : vector<2x2xf32>
    %420 = arith.mulf %411, %417 : vector<2x2xf32>
    %421 = arith.addf %419, %420 : vector<2x2xf32>
    %422 = math.tanh %421 : vector<2x2xf32>
    %423 = arith.mulf %418, %422 : vector<2x2xf32>
    %424 = vector.shape_cast %7 : vector<1x1xf32> to vector<1x1xf32>
    %425 = vector.broadcast %424 : vector<1x1xf32> to vector<2x8xf32>
    %426 = vector.extract_strided_slice %199 {offsets = [0, 0], sizes = [2, 1], strides = [1, 1]} : vector<2x2xf32> to vector<2x1xf32>
    %427 = vector.extract_strided_slice %231 {offsets = [0, 0], sizes = [2, 1], strides = [1, 1]} : vector<2x2xf32> to vector<2x1xf32>
    %428 = vector.extract_strided_slice %263 {offsets = [0, 0], sizes = [2, 1], strides = [1, 1]} : vector<2x2xf32> to vector<2x1xf32>
    %429 = vector.extract_strided_slice %295 {offsets = [0, 0], sizes = [2, 1], strides = [1, 1]} : vector<2x2xf32> to vector<2x1xf32>
    %430 = vector.extract_strided_slice %327 {offsets = [0, 0], sizes = [2, 1], strides = [1, 1]} : vector<2x2xf32> to vector<2x1xf32>
    %431 = vector.extract_strided_slice %359 {offsets = [0, 0], sizes = [2, 1], strides = [1, 1]} : vector<2x2xf32> to vector<2x1xf32>
    %432 = vector.extract_strided_slice %391 {offsets = [0, 0], sizes = [2, 1], strides = [1, 1]} : vector<2x2xf32> to vector<2x1xf32>
    %433 = vector.extract_strided_slice %423 {offsets = [0, 0], sizes = [2, 1], strides = [1, 1]} : vector<2x2xf32> to vector<2x1xf32>
    %434 = tpu.concatenate %426, %427, %428, %429, %430, %431, %432, %433 in 1 : vector<2x1xf32>, vector<2x1xf32>, vector<2x1xf32>, vector<2x1xf32>, vector<2x1xf32>, vector<2x1xf32>, vector<2x1xf32>, vector<2x1xf32> -> vector<2x8xf32>
    %435 = vector.extract_strided_slice %6 {offsets = [0, 0], sizes = [1, 1], strides = [1, 1]} : vector<1x2xf32> to vector<1x1xf32>
    %436 = vector.broadcast %435 : vector<1x1xf32> to vector<2x8xf32>
    %437 = arith.mulf %434, %436 : vector<2x8xf32>
    %438 = arith.addf %425, %437 : vector<2x8xf32>
    %439 = vector.extract_strided_slice %199 {offsets = [0, 1], sizes = [2, 1], strides = [1, 1]} : vector<2x2xf32> to vector<2x1xf32>
    %440 = vector.extract_strided_slice %231 {offsets = [0, 1], sizes = [2, 1], strides = [1, 1]} : vector<2x2xf32> to vector<2x1xf32>
    %441 = vector.extract_strided_slice %263 {offsets = [0, 1], sizes = [2, 1], strides = [1, 1]} : vector<2x2xf32> to vector<2x1xf32>
    %442 = vector.extract_strided_slice %295 {offsets = [0, 1], sizes = [2, 1], strides = [1, 1]} : vector<2x2xf32> to vector<2x1xf32>
    %443 = vector.extract_strided_slice %327 {offsets = [0, 1], sizes = [2, 1], strides = [1, 1]} : vector<2x2xf32> to vector<2x1xf32>
    %444 = vector.extract_strided_slice %359 {offsets = [0, 1], sizes = [2, 1], strides = [1, 1]} : vector<2x2xf32> to vector<2x1xf32>
    %445 = vector.extract_strided_slice %391 {offsets = [0, 1], sizes = [2, 1], strides = [1, 1]} : vector<2x2xf32> to vector<2x1xf32>
    %446 = vector.extract_strided_slice %423 {offsets = [0, 1], sizes = [2, 1], strides = [1, 1]} : vector<2x2xf32> to vector<2x1xf32>
    %447 = tpu.concatenate %439, %440, %441, %442, %443, %444, %445, %446 in 1 : vector<2x1xf32>, vector<2x1xf32>, vector<2x1xf32>, vector<2x1xf32>, vector<2x1xf32>, vector<2x1xf32>, vector<2x1xf32>, vector<2x1xf32> -> vector<2x8xf32>
    %448 = vector.extract_strided_slice %6 {offsets = [0, 1], sizes = [1, 1], strides = [1, 1]} : vector<1x2xf32> to vector<1x1xf32>
    %449 = vector.broadcast %448 : vector<1x1xf32> to vector<2x8xf32>
    %450 = arith.mulf %447, %449 : vector<2x8xf32>
    %451 = arith.addf %438, %450 : vector<2x8xf32>
    %c0_31 = arith.constant 0 : index
    %c0_32 = arith.constant 0 : index
    %452 = vector.load %arg2[%c0_31, %c0_32] : memref<2x8xf32, #tpu.memory_space<vmem>>, vector<2x8xf32>
    tpu.vector_store %arg2[%c0_31, %c0_32], %451 {strides = array<i32>} : memref<2x8xf32, #tpu.memory_space<vmem>>, vector<2x8xf32>,
    return
  }
}

</mosaic_0001>

<bundles_post_ra>
// kernel: tpu_custom_call.1
= control target key start
LH: loop header
LB: loop body
LE: loop exit
PB: predicated region body
PF: predicated region fallthrough
CT: control target
= control target key end

     0   :  { %7 = vsyncpa [#allocation3], 0  ;;  %s1293_s0 = inlined_call_operand.hbm [shape: f32[2,8], index: 0, kind: input, shape index: {}]   ;;  %s1294_s1 = inlined_call_operand.hbm [shape: f32[8,128], index: 1, kind: input, shape index: {}]   ;;  %s1295_s2 = inlined_call_operand.hbm [shape: f32[2,8], index: 2, kind: output, shape index: {}]  }
   0x1   :  { %8 = vsyncpa [#allocation6], 0 }
   0x2   :  { %9 = vsyncpa [#allocation4], 0  ;;  %s973_s9 = smov [#allocation2]   ;;  %s974_s11 = smov [#allocation5]  }
   0x3   :  { %s16_s10 = sshll.u32 %s973_s9, 4  ;;  %s26_s12 = sshll.u32 %s974_s11, 4  ;;  %s17_s10 = int_to_ptr.vmem [resolvable:$true] %s16_s10  ;;  %s27_s12 = int_to_ptr.vmem [resolvable:$true] %s26_s12 }
   0x4   :  { %s901_s15 = scalar_lea.hbm %s1293_s0, 32 }
   0x5   :  { %p902_p0 = scmp.ne.s32.totalorder %s1293_s0, %s901_s15  ;;  %p905_p1 = scmp.lt.u32.totalorder %s901_s15, %s1293_s0 }
   0x7   :  { %p907_p2 = pnand %p905_p1, %p902_p0 }
   0x9   :  { %910 = shalt.err (!%p907_p2)
}
   0xa   :  { %s911_s20 = scalar_lea.vmem %s17_s10, 32  ;;  %p916_p4 = scmp.lt.s32.totalorder %s17_s10, %s17_s10 }
   0xb   :  { %p912_p3 = scmp.ne.s32.totalorder %s17_s10, %s911_s20  ;;  %p917_p5 = scmp.lt.s32.totalorder %s911_s20, %s911_s20 }
   0xd   :  { %p918_p6 = por %p917_p5, %p916_p4 }
   0xf   :  { %p919_p7 = pnand %p918_p6, %p912_p3 }
  0x11   :  { %922 = shalt.err (!%p919_p7)
}
  0x12   :  { %19 = dma.hbm_to_vmem [thread:$0]  %s1293_s0, 32, %s17_s10, [#allocation3]  }
  0x13   :  { %s923_s25 = scalar_lea.hbm %s1294_s1, 128 }
  0x14   :  { %p924_p8 = scmp.ne.s32.totalorder %s1294_s1, %s923_s25  ;;  %p927_p9 = scmp.lt.u32.totalorder %s923_s25, %s1294_s1 }
  0x16   :  { %p929_p10 = pnand %p927_p9, %p924_p8 }
  0x18   :  { %932 = shalt.err (!%p929_p10)
}
  0x19   :  { %s933_s30 = scalar_lea.vmem %s27_s12, 128  ;;  %p938_p12 = scmp.lt.s32.totalorder %s27_s12, %s27_s12 }
  0x1a   :  { %p934_p11 = scmp.ne.s32.totalorder %s27_s12, %s933_s30  ;;  %p939_p13 = scmp.lt.s32.totalorder %s933_s30, %s933_s30 }
  0x1c   :  { %p940_p0 = por %p939_p13, %p938_p12 }
  0x1e   :  { %p941_p1 = pnand %p940_p0, %p934_p11 }
  0x20   :  { %944 = shalt.err (!%p941_p1)
}
  0x21   :  { %29 = dma.hbm_to_vmem [thread:$0]  %s1294_s1, 128, %s27_s12, [#allocation6]  }
  0x22   :  { %967 = dma.done.wait [#allocation3], 32  }
  0x23   :  { %968 = vsyncadd [#allocation3], 4294967264 }
  0x24   :  { %969 = dma.done.wait [#allocation6], 128  }
  0x25   :  { %970 = vsyncadd [#allocation6], 4294967168  ;;  %v47_v0 = vlaneseq  ;;  %v975_v1 = vmov 0   ;;  %v1043_v4 = vld [vmem:[#allocation5] sm:$0xff]  ;;  %v1045_v5 = vld [vmem:[#allocation2] sm:$0x3] }
  0x26   :  { %815 = vset.pattern.permute.xlu0 %v975_v1  ;;  %816 = vset.pattern.permute.xlu1 %v975_v1  ;;  %s976_s1 = smov 126   ;;  %v977_v7 = vmov 1   ;;  %vm38_vm0 = vcmask 31744   ;;  %v978_v20 = vmov 2.0   ;;  %vm40_vm1 = vcmask 48128   ;;  %s979_s4 = smov 4  }
  0x27   :  { %v48_v2 = vshrl.u32 %v47_v0, 7  ;;  %44 = vperm.xlu0 %815, %v1045_v5   ;;  %v39_v21 = vsel %vm38_vm0, 1.0, %v978_v20  ;;  %s980_s5 = smov 124   ;;  %s981_s6 = smov 2   ;;  %v982_v54 = vmov 10   ;;  %v983_v60 = vmov 11  }
  0x28   :  { %v41_v25 = vsel %vm40_vm1, %v39_v21, 1.0  ;;  %s990_s7 = smov 114   ;;  %s991_s8 = smov 115   ;;  %vm689_vm2 = vcmask 7168   ;;  %vm691_vm3 = vcmask 15360   ;;  %vm693_vm4 = vcmask 23552  }
  0x29   :  { %v49_v3 = vsub.s32 0, %v48_v2  ;;  %v64_v12 = vsub.s32 1, %v48_v2  ;;  %v277_v13 = vsub.s32 3, %v48_v2  ;;  %v78_v15 = vsub.s32 2, %v48_v2  ;;  %s992_s9 = smov 119   ;;  %s993_s10 = smov 121  }
  0x2a   :  { %v287_v18 = vsub.s32 4, %v48_v2  ;;  %s994_s11 = smov 118   ;;  %s995_s12 = smov 120   ;;  %vm696_vm5 = vcmask 39936   ;;  %vm699_vm6 = vcmask 56320   ;;  %vm746_vm7 = vcmask 58368  }
  0x2b   :  { %v1048_v6 = vrot.slane %v1043_v4, %v49_v3  ;;  %819 = vset.pattern.permute.xlu0 %v977_v7  ;;  %v1059_v14 = vrot.slane %v1043_v4, %v64_v12  ;;  %v1062_v16 = vrot.slane %v1043_v4, %v277_v13  ;;  %v1067_v22 = vrot.slane %v1043_v4, %v78_v15  ;;  %s996_s13 = smov 122   ;;  %s997_s14 = smov 116  }
  0x2c   :  { %v1072_v24 = vrot.slane %v1043_v4, %v287_v18  ;;  %v298_v28 = vrot.slane %v41_v25, %v49_v3  ;;  %s998_s15 = smov 117   ;;  %s999_s16 = smov 123  }
  0x2d   :  { %53 = vrot.lane.b32.xlu0 %v1048_v6, %s976_s1  ;;  %v279_v23 = vmul.f32 0.0, %v1062_v16  ;;  %s1000_s17 = smov 125   ;;  %s1001_s21 = smov [#allocation7]  }
  0x2e   :  { %v289_v29 = vmul.f32 0.0, %v1072_v24  ;;  %s754_s22 = sshll.u32 %s1001_s21, 4  ;;  %s755_s22 = int_to_ptr.vmem [resolvable:$true] %s754_s22 }
  0x2f   :  { %s945_s23 = scalar_lea.vmem %s755_s22, 32  ;;  %p950_p3 = scmp.lt.s32.totalorder %s755_s22, %s755_s22 }
  0x30   :  { %p946_p2 = scmp.ne.s32.totalorder %s755_s22, %s945_s23  ;;  %p951_p4 = scmp.lt.s32.totalorder %s945_s23, %s945_s23 }
  0x32   :  { %p952_p5 = por %p951_p4, %p950_p3 }
  0x34   :  { %p953_p6 = pnand %p952_p5, %p946_p2 }
  0xa6   :  { %v45_v8 = vpop.permute.xlu0 %44 }
  0xa7   :  { %v51_v9 = vmul.f32 %v1048_v6, %v45_v8  ;;  %v984_v8 = vmov 2  }
  0xaa   :  { %v1054_v10 = vpop.permute.xlu0 %53 }
  0xab   :  { %v56_v11 = vadd.f32 %v1054_v10, %v51_v9 }
  0xad   :  { %59 = vperm.xlu1 %816, %v56_v11  }
  0xb1   :  { %817 = vset.pattern.permute.xlu1 %v977_v7 }
  0xb2   :  { %73 = vperm.xlu1 %817, %v56_v11  }
 0x12c   :  { %v60_v17 = vpop.permute.xlu1 %59 }
 0x12d   :  { %v66_v19 = vmul.f32 %v1059_v14, %v60_v17 }
 0x12f   :  { %68 = vrot.lane.b32.xlu0 %v66_v19, %s979_s4 }
 0x131   :  { %v74_v26 = vpop.permute.xlu1 %73 }
 0x132   :  { %v80_v27 = vmul.f32 %v1067_v22, %v74_v26 }
 0x133   :  { %281 = vrot.lane.b32.xlu0 %v279_v23, %s979_s4 }
 0x134   :  { %82 = vrot.lane.b32.xlu1 %v80_v27, %s979_s4 }
 0x137   :  { %300 = vrot.lane.b32.xlu0 %v298_v28, %s979_s4 }
 0x138   :  { %291 = vrot.lane.b32.xlu1 %v289_v29, %s979_s4 }
 0x1a1   :  { %v69_v30 = vpop.permute.xlu0 %68 }
 0x1a2   :  { %v71_v31 = vadd.f32 %v69_v30, %v1048_v6 }
 0x1a5   :  { %v282_v32 = vpop.permute.xlu0 %281 }
 0x1a6   :  { %v83_v33 = vpop.permute.xlu1 %82 }
 0x1a7   :  { %v85_v34 = vadd.f32 %v83_v33, %v71_v31 }
 0x1a9   :  { %v284_v35 = vadd.f32 %v282_v32, %v85_v34  ;;  %v1082_v37 = vpop.permute.xlu0 %300 }
 0x1aa   :  { %v292_v36 = vpop.permute.xlu1 %291 }
 0x1ab   :  { %v294_v38 = vadd.f32 %v292_v36, %v284_v35 }
 0x1ad   :  { %v303_v39 = vmul.f32 %v1082_v37, %v294_v38 }
 0x1af   :  { %v764_v40 = vmul.f32 -1.442695, %v303_v39 }
 0x1b1   :  { %853 = vpow2.f32 %v764_v40 }
 0x1bb   :  { %v854_v41 = vpop.eup %853 }
 0x1bc   :  { %v307_v42 = vadd.f32 1.0, %v854_v41 }
 0x1be   :  { %855 = vrcp.f32 %v307_v42 }
 0x1c8   :  { %v856_v43 = vpop.eup %855 }
 0x1c9   :  { %v310_v44 = vmul.f32 2.0, %v856_v43  ;;  %v312_v51 = vmul.f32 0.0, %v856_v43 }
 0x1cb   :  { %v765_v45 = vadd.f32 -1.0, %v310_v44 }
 0x1cd   :  { %314 = vrot.lane.b32.xlu1 %v765_v45, %s980_s5 }
 0x1d1   :  { %87 = vperm.xlu1 %817, %v1045_v5  }
 0x1d5   :  { %818 = vset.pattern.permute.xlu1 %v975_v1 }
 0x23f   :  { %v315_v46 = vpop.permute.xlu1 %314 }
 0x240   :  { %v317_v47 = vmul.f32 %v856_v43, %v315_v46 }
 0x242   :  { %319 = vrot.lane.b32.xlu0 %v317_v47, %s981_s6 }
 0x250   :  { %v88_v48 = vpop.permute.xlu1 %87 }
 0x251   :  { %v90_v49 = vmul.f32 %v88_v48, %v1048_v6 }
 0x253   :  { %v91_v50 = vadd.f32 %v90_v49, %v1054_v10  ;;  %v985_v49 = vmov 3  }
 0x255   :  { %94 = vperm.xlu1 %818, %v91_v50  }
 0x259   :  { %820 = vset.pattern.permute.xlu1 %v982_v54 }
 0x2b4   :  { %v320_v52 = vpop.permute.xlu0 %319 }
 0x2b5   :  { %v322_v53 = vadd.f32 %v320_v52, %v312_v51 }
 0x2b7   :  { %857 = vtanh.f32 %v322_v53 }
 0x2c1   :  { %v858_v55 = vpop.eup %857 }
 0x2c2   :  { %325 = vrot.lane.b32.xlu0 %v858_v55, %s979_s4 }
 0x2c6   :  { %104 = vperm.xlu0 %819, %v91_v50  }
 0x2ca   :  { %822 = vset.pattern.permute.xlu0 %v984_v8 }
 0x2d4   :  { %v95_v56 = vpop.permute.xlu1 %94 }
 0x2d5   :  { %v97_v57 = vmul.f32 %v95_v56, %v1059_v14 }
 0x2d7   :  { %99 = vrot.lane.b32.xlu0 %v97_v57, %s979_s4 }
 0x334   :  { %v326_v58 = vpop.permute.xlu0 %325 }
 0x335   :  { %v1095_v59 = vmul.f32 %v856_v43, %v326_v58 }
 0x337   :  { %331 = vperm.xlu1 %820, %v1095_v59  }
 0x33b   :  { %821 = vset.pattern.permute.xlu1 %v983_v60 }
 0x33c   :  { %341 = vperm.xlu1 %821, %v1095_v59  }
 0x340   :  { %823 = vset.pattern.permute.xlu1 %v975_v1 }
 0x345   :  { %v105_v61 = vpop.permute.xlu0 %104 }
 0x346   :  { %v107_v62 = vmul.f32 %v105_v61, %v1067_v22 }
 0x348   :  { %109 = vrot.lane.b32.xlu1 %v107_v62, %s979_s4 }
 0x349   :  { %v100_v9 = vpop.permute.xlu0 %99 }
 0x34a   :  { %v102_v12 = vadd.f32 %v100_v9, %v1048_v6 }
 0x3b6   :  { %v332_v63 = vpop.permute.xlu1 %331 }
 0x3b7   :  { %v334_v0 = vmul.f32 %v332_v63, %v1062_v16 }
 0x3b9   :  { %336 = vrot.lane.b32.xlu0 %v334_v0, %s979_s4 }
 0x3bb   :  { %v342_v2 = vpop.permute.xlu1 %341 }
 0x3bc   :  { %v344_v3 = vmul.f32 %v342_v2, %v1072_v24 }
 0x3be   :  { %346 = vrot.lane.b32.xlu1 %v344_v3, %s979_s4 }
 0x3bf   :  { %v110_v11 = vpop.permute.xlu1 %109 }
 0x3c0   :  { %v112_v15 = vadd.f32 %v110_v11, %v102_v12 }
 0x42b   :  { %v337_v13 = vpop.permute.xlu0 %336 }
 0x42c   :  { %v339_v17 = vadd.f32 %v337_v13, %v112_v15 }
 0x430   :  { %v347_v18 = vpop.permute.xlu1 %346 }
 0x431   :  { %v349_v19 = vadd.f32 %v347_v18, %v339_v17 }
 0x433   :  { %v350_v20 = vmul.f32 %v349_v19, %v1082_v37 }
 0x435   :  { %v766_v21 = vmul.f32 -1.442695, %v350_v20 }
 0x437   :  { %859 = vpow2.f32 %v766_v21 }
 0x441   :  { %v860_v23 = vpop.eup %859 }
 0x442   :  { %v354_v25 = vadd.f32 1.0, %v860_v23 }
 0x444   :  { %861 = vrcp.f32 %v354_v25 }
 0x44e   :  { %v862_v26 = vpop.eup %861 }
 0x44f   :  { %v357_v27 = vmul.f32 2.0, %v862_v26  ;;  %v359_v34 = vmul.f32 %v862_v26, %v322_v53 }
 0x451   :  { %v767_v28 = vadd.f32 -1.0, %v357_v27 }
 0x453   :  { %361 = vrot.lane.b32.xlu0 %v767_v28, %s980_s5 }
 0x457   :  { %114 = vperm.xlu0 %822, %v1045_v5  }
 0x45b   :  { %824 = vset.pattern.permute.xlu0 %v977_v7 }
 0x4c5   :  { %v362_v29 = vpop.permute.xlu0 %361 }
 0x4c6   :  { %v364_v30 = vmul.f32 %v862_v26, %v362_v29 }
 0x4c8   :  { %366 = vrot.lane.b32.xlu1 %v364_v30, %s981_s6 }
 0x4d6   :  { %v115_v31 = vpop.permute.xlu0 %114 }
 0x4d7   :  { %v117_v32 = vmul.f32 %v115_v31, %v1048_v6 }
 0x4d9   :  { %v118_v33 = vadd.f32 %v117_v32, %v1054_v10 }
 0x4db   :  { %131 = vperm.xlu0 %824, %v118_v33  }
 0x4df   :  { %827 = vset.pattern.permute.xlu0 %v985_v49 }
 0x53a   :  { %v367_v35 = vpop.permute.xlu1 %366 }
 0x53b   :  { %v369_v36 = vadd.f32 %v367_v35, %v359_v34 }
 0x53d   :  { %863 = vtanh.f32 %v369_v36 }
 0x547   :  { %v864_v38 = vpop.eup %863 }
 0x548   :  { %372 = vrot.lane.b32.xlu1 %v864_v38, %s979_s4 }
 0x54c   :  { %121 = vperm.xlu1 %823, %v118_v33   ;;  %v986_v33 = vmov 4  }
 0x550   :  { %825 = vset.pattern.permute.xlu1 %v982_v54 }
 0x55a   :  { %v132_v41 = vpop.permute.xlu0 %131 }
 0x55b   :  { %v134_v42 = vmul.f32 %v132_v41, %v1067_v22 }
 0x5ba   :  { %v373_v39 = vpop.permute.xlu1 %372 }
 0x5bb   :  { %v1117_v40 = vmul.f32 %v862_v26, %v373_v39 }
 0x5bd   :  { %378 = vperm.xlu1 %825, %v1117_v40  }
 0x5c1   :  { %826 = vset.pattern.permute.xlu1 %v983_v60 }
 0x5c2   :  { %388 = vperm.xlu1 %826, %v1117_v40  }
 0x5c6   :  { %136 = vrot.lane.b32.xlu1 %v134_v42, %s979_s4 }
 0x5c7   :  { %828 = vset.pattern.permute.xlu1 %v975_v1 }
 0x5cb   :  { %v122_v43 = vpop.permute.xlu1 %121 }
 0x5cc   :  { %v124_v44 = vmul.f32 %v122_v43, %v1059_v14 }
 0x5ce   :  { %126 = vrot.lane.b32.xlu0 %v124_v44, %s979_s4 }
 0x63c   :  { %v379_v45 = vpop.permute.xlu1 %378 }
 0x63d   :  { %v381_v46 = vmul.f32 %v379_v45, %v1062_v16 }
 0x63f   :  { %383 = vrot.lane.b32.xlu0 %v381_v46, %s979_s4 }
 0x640   :  { %v127_v50 = vpop.permute.xlu0 %126 }
 0x641   :  { %v389_v47 = vpop.permute.xlu1 %388  ;;  %v129_v52 = vadd.f32 %v127_v50, %v1048_v6 }
 0x642   :  { %v391_v48 = vmul.f32 %v389_v47, %v1072_v24 }
 0x644   :  { %393 = vrot.lane.b32.xlu1 %v391_v48, %s979_s4 }
 0x645   :  { %v137_v51 = vpop.permute.xlu1 %136 }
 0x646   :  { %v139_v55 = vadd.f32 %v137_v51, %v129_v52 }
 0x6b1   :  { %v384_v53 = vpop.permute.xlu0 %383 }
 0x6b2   :  { %v386_v56 = vadd.f32 %v384_v53, %v139_v55 }
 0x6b6   :  { %v394_v57 = vpop.permute.xlu1 %393 }
 0x6b7   :  { %v396_v58 = vadd.f32 %v394_v57, %v386_v56 }
 0x6b9   :  { %v397_v61 = vmul.f32 %v396_v58, %v1082_v37 }
 0x6bb   :  { %v768_v62 = vmul.f32 -1.442695, %v397_v61 }
 0x6bd   :  { %865 = vpow2.f32 %v768_v62 }
 0x6c7   :  { %v866_v63 = vpop.eup %865 }
 0x6c8   :  { %v401_v0 = vadd.f32 1.0, %v866_v63 }
 0x6ca   :  { %867 = vrcp.f32 %v401_v0 }
 0x6d4   :  { %v868_v2 = vpop.eup %867 }
 0x6d5   :  { %v404_v3 = vmul.f32 2.0, %v868_v2  ;;  %v406_v17 = vmul.f32 %v868_v2, %v369_v36 }
 0x6d7   :  { %v769_v8 = vadd.f32 -1.0, %v404_v3 }
 0x6d9   :  { %408 = vrot.lane.b32.xlu0 %v769_v8, %s980_s5 }
 0x6dd   :  { %141 = vperm.xlu0 %827, %v1045_v5  }
 0x6e1   :  { %829 = vset.pattern.permute.xlu0 %v977_v7 }
 0x74b   :  { %v409_v9 = vpop.permute.xlu0 %408 }
 0x74c   :  { %v411_v11 = vmul.f32 %v868_v2, %v409_v9 }
 0x74e   :  { %413 = vrot.lane.b32.xlu1 %v411_v11, %s981_s6 }
 0x75c   :  { %v142_v12 = vpop.permute.xlu0 %141 }
 0x75d   :  { %v144_v13 = vmul.f32 %v142_v12, %v1048_v6 }
 0x75f   :  { %v145_v15 = vadd.f32 %v144_v13, %v1054_v10 }
 0x761   :  { %158 = vperm.xlu0 %829, %v145_v15  }
 0x765   :  { %832 = vset.pattern.permute.xlu0 %v986_v33 }
 0x7c0   :  { %v414_v18 = vpop.permute.xlu1 %413 }
 0x7c1   :  { %v416_v19 = vadd.f32 %v414_v18, %v406_v17  ;;  %v987_v17 = vmov 5  }
 0x7c3   :  { %869 = vtanh.f32 %v416_v19 }
 0x7cd   :  { %v870_v20 = vpop.eup %869 }
 0x7ce   :  { %419 = vrot.lane.b32.xlu1 %v870_v20, %s979_s4 }
 0x7d2   :  { %148 = vperm.xlu1 %828, %v145_v15  }
 0x7d6   :  { %830 = vset.pattern.permute.xlu1 %v982_v54 }
 0x7e0   :  { %v159_v25 = vpop.permute.xlu0 %158 }
 0x7e1   :  { %v161_v26 = vmul.f32 %v159_v25, %v1067_v22 }
 0x840   :  { %v420_v21 = vpop.permute.xlu1 %419 }
 0x841   :  { %v1141_v23 = vmul.f32 %v868_v2, %v420_v21 }
 0x843   :  { %425 = vperm.xlu1 %830, %v1141_v23  }
 0x847   :  { %831 = vset.pattern.permute.xlu1 %v983_v60 }
 0x848   :  { %435 = vperm.xlu1 %831, %v1141_v23  }
 0x84c   :  { %163 = vrot.lane.b32.xlu1 %v161_v26, %s979_s4 }
 0x84d   :  { %833 = vset.pattern.permute.xlu1 %v975_v1 }
 0x851   :  { %v149_v27 = vpop.permute.xlu1 %148 }
 0x852   :  { %v151_v28 = vmul.f32 %v149_v27, %v1059_v14 }
 0x854   :  { %153 = vrot.lane.b32.xlu0 %v151_v28, %s979_s4 }
 0x8c2   :  { %v426_v29 = vpop.permute.xlu1 %425 }
 0x8c3   :  { %v428_v30 = vmul.f32 %v426_v29, %v1062_v16 }
 0x8c5   :  { %430 = vrot.lane.b32.xlu0 %v428_v30, %s979_s4 }
 0x8c6   :  { %v154_v34 = vpop.permute.xlu0 %153 }
 0x8c7   :  { %v436_v31 = vpop.permute.xlu1 %435  ;;  %v156_v36 = vadd.f32 %v154_v34, %v1048_v6 }
 0x8c8   :  { %v438_v32 = vmul.f32 %v436_v31, %v1072_v24 }
 0x8ca   :  { %440 = vrot.lane.b32.xlu1 %v438_v32, %s979_s4 }
 0x8cb   :  { %v164_v35 = vpop.permute.xlu1 %163 }
 0x8cc   :  { %v166_v39 = vadd.f32 %v164_v35, %v156_v36 }
 0x937   :  { %v431_v38 = vpop.permute.xlu0 %430 }
 0x938   :  { %v433_v41 = vadd.f32 %v431_v38, %v166_v39 }
 0x93c   :  { %v441_v42 = vpop.permute.xlu1 %440 }
 0x93d   :  { %v443_v43 = vadd.f32 %v441_v42, %v433_v41 }
 0x93f   :  { %v444_v44 = vmul.f32 %v443_v43, %v1082_v37 }
 0x941   :  { %v770_v45 = vmul.f32 -1.442695, %v444_v44 }
 0x943   :  { %871 = vpow2.f32 %v770_v45 }
 0x94d   :  { %v872_v46 = vpop.eup %871 }
 0x94e   :  { %v448_v47 = vadd.f32 1.0, %v872_v46 }
 0x950   :  { %873 = vrcp.f32 %v448_v47 }
 0x95a   :  { %v874_v48 = vpop.eup %873 }
 0x95b   :  { %v451_v49 = vmul.f32 2.0, %v874_v48  ;;  %v453_v57 = vmul.f32 %v874_v48, %v416_v19 }
 0x95d   :  { %v771_v50 = vadd.f32 -1.0, %v451_v49 }
 0x95f   :  { %455 = vrot.lane.b32.xlu0 %v771_v50, %s980_s5 }
 0x963   :  { %168 = vperm.xlu0 %832, %v1045_v5  }
 0x967   :  { %834 = vset.pattern.permute.xlu0 %v977_v7 }
 0x9d1   :  { %v456_v51 = vpop.permute.xlu0 %455 }
 0x9d2   :  { %v458_v52 = vmul.f32 %v874_v48, %v456_v51 }
 0x9d4   :  { %460 = vrot.lane.b32.xlu1 %v458_v52, %s981_s6 }
 0x9e2   :  { %v169_v53 = vpop.permute.xlu0 %168 }
 0x9e3   :  { %v171_v55 = vmul.f32 %v169_v53, %v1048_v6 }
 0x9e5   :  { %v172_v56 = vadd.f32 %v171_v55, %v1054_v10 }
 0x9e7   :  { %185 = vperm.xlu0 %834, %v172_v56  }
 0x9eb   :  { %837 = vset.pattern.permute.xlu0 %v987_v17 }
 0xa46   :  { %v461_v58 = vpop.permute.xlu1 %460 }
 0xa47   :  { %v463_v61 = vadd.f32 %v461_v58, %v453_v57  ;;  %v988_v58 = vmov 6  }
 0xa49   :  { %875 = vtanh.f32 %v463_v61 }
 0xa53   :  { %v876_v62 = vpop.eup %875 }
 0xa54   :  { %466 = vrot.lane.b32.xlu1 %v876_v62, %s979_s4 }
 0xa58   :  { %175 = vperm.xlu1 %833, %v172_v56  }
 0xa5c   :  { %835 = vset.pattern.permute.xlu1 %v982_v54 }
 0xa66   :  { %v186_v2 = vpop.permute.xlu0 %185 }
 0xa67   :  { %v188_v3 = vmul.f32 %v186_v2, %v1067_v22 }
 0xac6   :  { %v467_v63 = vpop.permute.xlu1 %466 }
 0xac7   :  { %v1165_v0 = vmul.f32 %v874_v48, %v467_v63 }
 0xac9   :  { %472 = vperm.xlu1 %835, %v1165_v0  }
 0xacd   :  { %836 = vset.pattern.permute.xlu1 %v983_v60 }
 0xace   :  { %482 = vperm.xlu1 %836, %v1165_v0  }
 0xad2   :  { %190 = vrot.lane.b32.xlu1 %v188_v3, %s979_s4 }
 0xad3   :  { %838 = vset.pattern.permute.xlu1 %v975_v1 }
 0xad7   :  { %v176_v8 = vpop.permute.xlu1 %175 }
 0xad8   :  { %v178_v9 = vmul.f32 %v176_v8, %v1059_v14 }
 0xada   :  { %180 = vrot.lane.b32.xlu0 %v178_v9, %s979_s4 }
 0xb48   :  { %v473_v11 = vpop.permute.xlu1 %472 }
 0xb49   :  { %v475_v12 = vmul.f32 %v473_v11, %v1062_v16 }
 0xb4b   :  { %477 = vrot.lane.b32.xlu0 %v475_v12, %s979_s4 }
 0xb4c   :  { %v181_v18 = vpop.permute.xlu0 %180 }
 0xb4d   :  { %v483_v13 = vpop.permute.xlu1 %482  ;;  %v183_v20 = vadd.f32 %v181_v18, %v1048_v6 }
 0xb4e   :  { %v485_v15 = vmul.f32 %v483_v13, %v1072_v24 }
 0xb50   :  { %487 = vrot.lane.b32.xlu1 %v485_v15, %s979_s4 }
 0xb51   :  { %v191_v19 = vpop.permute.xlu1 %190 }
 0xb52   :  { %v193_v25 = vadd.f32 %v191_v19, %v183_v20 }
 0xbbd   :  { %v478_v21 = vpop.permute.xlu0 %477 }
 0xbbe   :  { %v480_v26 = vadd.f32 %v478_v21, %v193_v25 }
 0xbc2   :  { %v488_v27 = vpop.permute.xlu1 %487 }
 0xbc3   :  { %v490_v28 = vadd.f32 %v488_v27, %v480_v26 }
 0xbc5   :  { %v491_v29 = vmul.f32 %v490_v28, %v1082_v37 }
 0xbc7   :  { %v772_v30 = vmul.f32 -1.442695, %v491_v29 }
 0xbc9   :  { %877 = vpow2.f32 %v772_v30 }
 0xbd3   :  { %v878_v31 = vpop.eup %877 }
 0xbd4   :  { %v495_v32 = vadd.f32 1.0, %v878_v31 }
 0xbd6   :  { %879 = vrcp.f32 %v495_v32 }
 0xbe0   :  { %v880_v33 = vpop.eup %879 }
 0xbe1   :  { %v498_v34 = vmul.f32 2.0, %v880_v33  ;;  %v500_v43 = vmul.f32 %v880_v33, %v463_v61 }
 0xbe3   :  { %v773_v35 = vadd.f32 -1.0, %v498_v34 }
 0xbe5   :  { %502 = vrot.lane.b32.xlu0 %v773_v35, %s980_s5 }
 0xbe9   :  { %195 = vperm.xlu0 %837, %v1045_v5  }
 0xbed   :  { %839 = vset.pattern.permute.xlu0 %v977_v7 }
 0xc57   :  { %v503_v36 = vpop.permute.xlu0 %502 }
 0xc58   :  { %v505_v38 = vmul.f32 %v880_v33, %v503_v36 }
 0xc5a   :  { %507 = vrot.lane.b32.xlu1 %v505_v38, %s981_s6 }
 0xc68   :  { %v196_v39 = vpop.permute.xlu0 %195 }
 0xc69   :  { %v198_v41 = vmul.f32 %v196_v39, %v1048_v6 }
 0xc6b   :  { %v199_v42 = vadd.f32 %v198_v41, %v1054_v10 }
 0xc6d   :  { %212 = vperm.xlu0 %839, %v199_v42  }
 0xc71   :  { %842 = vset.pattern.permute.xlu0 %v988_v58 }
 0xccc   :  { %v508_v44 = vpop.permute.xlu1 %507 }
 0xccd   :  { %v510_v45 = vadd.f32 %v508_v44, %v500_v43 }
 0xccf   :  { %881 = vtanh.f32 %v510_v45 }
 0xcd9   :  { %v882_v46 = vpop.eup %881 }
 0xcda   :  { %513 = vrot.lane.b32.xlu1 %v882_v46, %s979_s4 }
 0xcde   :  { %202 = vperm.xlu1 %838, %v199_v42  }
 0xce2   :  { %840 = vset.pattern.permute.xlu1 %v982_v54 }
 0xcec   :  { %v213_v49 = vpop.permute.xlu0 %212 }
 0xced   :  { %v215_v50 = vmul.f32 %v213_v49, %v1067_v22 }
 0xd4c   :  { %v514_v47 = vpop.permute.xlu1 %513 }
 0xd4d   :  { %v1189_v48 = vmul.f32 %v880_v33, %v514_v47 }
 0xd4f   :  { %519 = vperm.xlu1 %840, %v1189_v48  }
 0xd53   :  { %841 = vset.pattern.permute.xlu1 %v983_v60 }
 0xd54   :  { %529 = vperm.xlu1 %841, %v1189_v48  }
 0xd58   :  { %217 = vrot.lane.b32.xlu1 %v215_v50, %s979_s4 }
 0xd59   :  { %843 = vset.pattern.permute.xlu1 %v975_v1 }
 0xd5d   :  { %v203_v51 = vpop.permute.xlu1 %202 }
 0xd5e   :  { %v205_v52 = vmul.f32 %v203_v51, %v1059_v14 }
 0xd60   :  { %207 = vrot.lane.b32.xlu0 %v205_v52, %s979_s4 }
 0xdce   :  { %v520_v53 = vpop.permute.xlu1 %519 }
 0xdcf   :  { %v522_v55 = vmul.f32 %v520_v53, %v1062_v16 }
 0xdd1   :  { %524 = vrot.lane.b32.xlu0 %v522_v55, %s979_s4 }
 0xdd2   :  { %v208_v61 = vpop.permute.xlu0 %207 }
 0xdd3   :  { %v530_v56 = vpop.permute.xlu1 %529  ;;  %v210_v63 = vadd.f32 %v208_v61, %v1048_v6 }
 0xdd4   :  { %v532_v57 = vmul.f32 %v530_v56, %v1072_v24 }
 0xdd6   :  { %534 = vrot.lane.b32.xlu1 %v532_v57, %s979_s4 }
 0xdd7   :  { %v218_v62 = vpop.permute.xlu1 %217 }
 0xdd8   :  { %v220_v3 = vadd.f32 %v218_v62, %v210_v63 }
 0xe43   :  { %v525_v2 = vpop.permute.xlu0 %524 }
 0xe44   :  { %v527_v8 = vadd.f32 %v525_v2, %v220_v3 }
 0xe48   :  { %v535_v9 = vpop.permute.xlu1 %534 }
 0xe49   :  { %v537_v11 = vadd.f32 %v535_v9, %v527_v8 }
 0xe4b   :  { %v538_v12 = vmul.f32 %v537_v11, %v1082_v37 }
 0xe4d   :  { %v774_v13 = vmul.f32 -1.442695, %v538_v12 }
 0xe4f   :  { %883 = vpow2.f32 %v774_v13 }
 0xe59   :  { %v884_v15 = vpop.eup %883 }
 0xe5a   :  { %v542_v17 = vadd.f32 1.0, %v884_v15 }
 0xe5c   :  { %885 = vrcp.f32 %v542_v17 }
 0xe66   :  { %v886_v18 = vpop.eup %885 }
 0xe67   :  { %v545_v19 = vmul.f32 2.0, %v886_v18  ;;  %v547_v29 = vmul.f32 %v886_v18, %v510_v45  ;;  %v989_v45 = vmov 7  }
 0xe69   :  { %v775_v20 = vadd.f32 -1.0, %v545_v19 }
 0xe6b   :  { %549 = vrot.lane.b32.xlu0 %v775_v20, %s980_s5 }
 0xe6f   :  { %222 = vperm.xlu0 %842, %v1045_v5  }
 0xe73   :  { %844 = vset.pattern.permute.xlu0 %v977_v7 }
 0xedd   :  { %v550_v21 = vpop.permute.xlu0 %549 }
 0xede   :  { %v552_v25 = vmul.f32 %v886_v18, %v550_v21 }
 0xee0   :  { %554 = vrot.lane.b32.xlu1 %v552_v25, %s981_s6 }
 0xeee   :  { %v223_v26 = vpop.permute.xlu0 %222 }
 0xeef   :  { %v225_v27 = vmul.f32 %v223_v26, %v1048_v6 }
 0xef1   :  { %v226_v28 = vadd.f32 %v225_v27, %v1054_v10 }
 0xef3   :  { %239 = vperm.xlu0 %844, %v226_v28  }
 0xef7   :  { %847 = vset.pattern.permute.xlu0 %v989_v45 }
 0xf52   :  { %v555_v30 = vpop.permute.xlu1 %554 }
 0xf53   :  { %v557_v31 = vadd.f32 %v555_v30, %v547_v29 }
 0xf55   :  { %887 = vtanh.f32 %v557_v31 }
 0xf5f   :  { %v888_v32 = vpop.eup %887 }
 0xf60   :  { %560 = vrot.lane.b32.xlu1 %v888_v32, %s979_s4 }
 0xf64   :  { %229 = vperm.xlu1 %843, %v226_v28  }
 0xf68   :  { %845 = vset.pattern.permute.xlu1 %v982_v54 }
 0xf72   :  { %v240_v35 = vpop.permute.xlu0 %239 }
 0xf73   :  { %v242_v36 = vmul.f32 %v240_v35, %v1067_v22 }
 0xfd2   :  { %v561_v33 = vpop.permute.xlu1 %560 }
 0xfd3   :  { %v1213_v34 = vmul.f32 %v886_v18, %v561_v33 }
 0xfd5   :  { %566 = vperm.xlu1 %845, %v1213_v34  }
 0xfd9   :  { %846 = vset.pattern.permute.xlu1 %v983_v60 }
 0xfda   :  { %576 = vperm.xlu1 %846, %v1213_v34  }
 0xfde   :  { %244 = vrot.lane.b32.xlu1 %v242_v36, %s979_s4 }
 0xfdf   :  { %848 = vset.pattern.permute.xlu1 %v975_v1 }
 0xfe3   :  { %v230_v38 = vpop.permute.xlu1 %229 }
 0xfe4   :  { %v232_v39 = vmul.f32 %v230_v38, %v1059_v14 }
 0xfe6   :  { %234 = vrot.lane.b32.xlu0 %v232_v39, %s979_s4 }
0x1054   :  { %v567_v41 = vpop.permute.xlu1 %566 }
0x1055   :  { %v569_v42 = vmul.f32 %v567_v41, %v1062_v16 }
0x1057   :  { %571 = vrot.lane.b32.xlu0 %v569_v42, %s979_s4 }
0x1058   :  { %v235_v46 = vpop.permute.xlu0 %234 }
0x1059   :  { %v577_v43 = vpop.permute.xlu1 %576  ;;  %v237_v1 = vadd.f32 %v235_v46, %v1048_v6 }
0x105a   :  { %v579_v44 = vmul.f32 %v577_v43, %v1072_v24 }
0x105c   :  { %581 = vrot.lane.b32.xlu1 %v579_v44, %s979_s4 }
0x105d   :  { %v245_v47 = vpop.permute.xlu1 %244 }
0x105e   :  { %v247_v50 = vadd.f32 %v245_v47, %v237_v1 }
0x10c9   :  { %v572_v49 = vpop.permute.xlu0 %571 }
0x10ca   :  { %v574_v51 = vadd.f32 %v572_v49, %v247_v50 }
0x10ce   :  { %v582_v52 = vpop.permute.xlu1 %581 }
0x10cf   :  { %v584_v53 = vadd.f32 %v582_v52, %v574_v51 }
0x10d1   :  { %v585_v55 = vmul.f32 %v584_v53, %v1082_v37 }
0x10d3   :  { %v776_v56 = vmul.f32 -1.442695, %v585_v55 }
0x10d5   :  { %889 = vpow2.f32 %v776_v56 }
0x10df   :  { %v890_v57 = vpop.eup %889 }
0x10e0   :  { %v589_v58 = vadd.f32 1.0, %v890_v57 }
0x10e2   :  { %891 = vrcp.f32 %v589_v58 }
0x10ec   :  { %v892_v61 = vpop.eup %891 }
0x10ed   :  { %v592_v62 = vmul.f32 2.0, %v892_v61  ;;  %v594_v12 = vmul.f32 %v892_v61, %v557_v31 }
0x10ef   :  { %v777_v63 = vadd.f32 -1.0, %v592_v62 }
0x10f1   :  { %596 = vrot.lane.b32.xlu0 %v777_v63, %s980_s5 }
0x10f5   :  { %249 = vperm.xlu0 %847, %v1045_v5  }
0x10f9   :  { %849 = vset.pattern.permute.xlu0 %v977_v7 }
0x1163   :  { %v597_v2 = vpop.permute.xlu0 %596 }
0x1164   :  { %v599_v3 = vmul.f32 %v892_v61, %v597_v2 }
0x1166   :  { %601 = vrot.lane.b32.xlu1 %v599_v3, %s981_s6 }
0x1174   :  { %v250_v8 = vpop.permute.xlu0 %249 }
0x1175   :  { %v252_v9 = vmul.f32 %v250_v8, %v1048_v6 }
0x1177   :  { %v253_v11 = vadd.f32 %v252_v9, %v1054_v10 }
0x1179   :  { %266 = vperm.xlu0 %849, %v253_v11  }
0x117d   :  { %852 = vset.pattern.permute.xlu0 %v983_v60 }
0x11d8   :  { %v602_v13 = vpop.permute.xlu1 %601 }
0x11d9   :  { %v604_v15 = vadd.f32 %v602_v13, %v594_v12 }
0x11db   :  { %893 = vtanh.f32 %v604_v15 }
0x11e5   :  { %v894_v17 = vpop.eup %893 }
0x11e6   :  { %607 = vrot.lane.b32.xlu1 %v894_v17, %s979_s4 }
0x11ea   :  { %256 = vperm.xlu1 %848, %v253_v11  }
0x11ee   :  { %850 = vset.pattern.permute.xlu1 %v982_v54 }
0x11f8   :  { %v267_v18 = vpop.permute.xlu0 %266 }
0x11f9   :  { %v269_v10 = vmul.f32 %v267_v18, %v1067_v22 }
0x1258   :  { %v608_v5 = vpop.permute.xlu1 %607 }
0x1259   :  { %v1238_v7 = vmul.f32 %v892_v61, %v608_v5 }
0x125b   :  { %613 = vperm.xlu1 %850, %v1238_v7  }
0x125f   :  { %851 = vset.pattern.permute.xlu1 %v983_v60 }
0x1260   :  { %623 = vperm.xlu1 %851, %v1238_v7  }
0x1264   :  { %271 = vrot.lane.b32.xlu1 %v269_v10, %s979_s4 }
0x1269   :  { %v257_v19 = vpop.permute.xlu1 %256 }
0x126a   :  { %v259_v20 = vmul.f32 %v257_v19, %v1059_v14 }
0x126c   :  { %261 = vrot.lane.b32.xlu0 %v259_v20, %s979_s4 }
0x12da   :  { %v614_v54 = vpop.permute.xlu1 %613 }
0x12db   :  { %v616_v21 = vmul.f32 %v614_v54, %v1062_v16 }
0x12dd   :  { %618 = vrot.lane.b32.xlu0 %v616_v21, %s979_s4 }
0x12de   :  { %v262_v60 = vpop.permute.xlu0 %261 }
0x12df   :  { %v624_v25 = vpop.permute.xlu1 %623  ;;  %v264_v22 = vadd.f32 %v262_v60, %v1048_v6 }
0x12e0   :  { %v626_v26 = vmul.f32 %v624_v25, %v1072_v24 }
0x12e2   :  { %628 = vrot.lane.b32.xlu1 %v626_v26, %s979_s4 }
0x12e3   :  { %v272_v27 = vpop.permute.xlu1 %271 }
0x12e4   :  { %v274_v29 = vadd.f32 %v272_v27, %v264_v22 }
0x134f   :  { %v619_v28 = vpop.permute.xlu0 %618 }
0x1350   :  { %v621_v30 = vadd.f32 %v619_v28, %v274_v29 }
0x1354   :  { %v629_v14 = vpop.permute.xlu1 %628 }
0x1355   :  { %v631_v31 = vadd.f32 %v629_v14, %v621_v30 }
0x1357   :  { %v632_v32 = vmul.f32 %v631_v31, %v1082_v37 }
0x1359   :  { %v778_v33 = vmul.f32 -1.442695, %v632_v32 }
0x135b   :  { %895 = vpow2.f32 %v778_v33 }
0x1365   :  { %v896_v16 = vpop.eup %895 }
0x1366   :  { %v636_v35 = vadd.f32 1.0, %v896_v16 }
0x1368   :  { %897 = vrcp.f32 %v636_v35 }
0x1372   :  { %v898_v36 = vpop.eup %897 }
0x1373   :  { %v639_v24 = vmul.f32 2.0, %v898_v36  ;;  %v641_v6 = vmul.f32 %v898_v36, %v604_v15 }
0x1375   :  { %v779_v38 = vadd.f32 -1.0, %v639_v24 }
0x1377   :  { %643 = vrot.lane.b32.xlu0 %v779_v38, %s980_s5 }
0x13e9   :  { %v644_v39 = vpop.permute.xlu0 %643 }
0x13ea   :  { %v646_v41 = vmul.f32 %v898_v36, %v644_v39 }
0x13ec   :  { %648 = vrot.lane.b32.xlu1 %v646_v41, %s981_s6 }
0x13f0   :  { %659 = vrot.lane.b32.xlu1 %v1043_v4, %s990_s7 }
0x13f4   :  { %739 = vrot.lane.b32.xlu1 %v1043_v4, %s991_s8 }
0x13f8   :  { %667 = vrot.lane.b32.xlu1 %v1117_v40, %s992_s9 }
0x13fc   :  { %673 = vrot.lane.b32.xlu1 %v1165_v0, %s993_s10 }
0x1400   :  { %711 = vrot.lane.b32.xlu1 %v1117_v40, %s994_s11 }
0x1404   :  { %714 = vrot.lane.b32.xlu1 %v1141_v23, %s992_s9 }
0x1408   :  { %717 = vrot.lane.b32.xlu1 %v1165_v0, %s995_s12 }
0x140c   :  { %720 = vrot.lane.b32.xlu1 %v1189_v48, %s993_s10 }
0x1410   :  { %723 = vrot.lane.b32.xlu1 %v1213_v34, %s996_s13 }
0x145e   :  { %v649_v37 = vpop.permute.xlu1 %648 }
0x145f   :  { %v651_v42 = vadd.f32 %v649_v37, %v641_v6 }
0x1461   :  { %899 = vtanh.f32 %v651_v42 }
0x1462   :  { %v660_v43 = vpop.permute.xlu1 %659 }
0x1463   :  { %780 = vpush %v660_v43 }
0x1466   :  { %v740_v45 = vpop.permute.xlu1 %739 }
0x146b   :  { %v900_v44 = vpop.eup %899 }
0x146c   :  { %654 = vrot.lane.b32.xlu0 %v900_v44, %s979_s4 }
0x1470   :  { %701 = vrot.lane.b32.xlu0 %v1043_v4, %s997_s14 }
0x1474   :  { %664 = vrot.lane.b32.xlu0 %v1095_v59, %s994_s11 }
0x1478   :  { %670 = vrot.lane.b32.xlu0 %v1141_v23, %s995_s12 }
0x147c   :  { %708 = vrot.lane.b32.xlu0 %v1095_v59, %s998_s15  ;;  %v668_v59 = vpop.permute.xlu1 %667 }
0x1480   :  { %676 = vrot.lane.b32.xlu0 %v1189_v48, %s996_s13  ;;  %v674_v48 = vpop.permute.xlu1 %673 }
0x1484   :  { %679 = vrot.lane.b32.xlu0 %v1213_v34, %s999_s16  ;;  %v712_v34 = vpop.permute.xlu1 %711 }
0x1488   :  { %682 = vrot.lane.b32.xlu0 %v1238_v7, %s980_s5  ;;  %v715_v1 = vpop.permute.xlu1 %714 }
0x148c   :  { %v718_v50 = vpop.permute.xlu1 %717 }
0x1490   :  { %v721_v56 = vpop.permute.xlu1 %720 }
0x1494   :  { %s781_s18 = spop %780  ;;  %v724_v11 = vpop.permute.xlu1 %723 }
0x1495   :  { %v662_v17 = vstv %s781_s18 }
0x14de   :  { %v655_v40 = vpop.permute.xlu0 %654 }
0x14df   :  { %v657_v0 = vmul.f32 %v898_v36, %v655_v40 }
0x14e1   :  { %729 = vrot.lane.b32.xlu1 %v657_v0, %s980_s5  ;;  %686 = vrot.lane.b32.xlu0 %v657_v0, %s1000_s17 }
0x14e2   :  { %v702_v4 = vpop.permute.xlu0 %701 }
0x14e3   :  { %782 = vpush %v702_v4 }
0x14e4   :  { %784 = vpush %v740_v45 }
0x14e5   :  { %726 = vrot.lane.b32.xlu0 %v1238_v7, %s999_s16 }
0x14e6   :  { %v665_v23 = vpop.permute.xlu0 %664 }
0x14e7   :  { %v690_v53 = vsel %vm689_vm2, %v665_v23, %v668_v59 }
0x14ea   :  { %v671_v46 = vpop.permute.xlu0 %670 }
0x14eb   :  { %v692_v55 = vsel %vm691_vm3, %v690_v53, %v671_v46 }
0x14ec   :  { %v694_v61 = vsel %vm693_vm4, %v692_v55, %v674_v48 }
0x14ee   :  { %v709_v47 = vpop.permute.xlu0 %708 }
0x14ef   :  { %v732_v52 = vsel %vm689_vm2, %v709_v47, %v712_v34 }
0x14f0   :  { %v733_v57 = vsel %vm691_vm3, %v732_v52, %v715_v1 }
0x14f1   :  { %v734_v62 = vsel %vm693_vm4, %v733_v57, %v718_v50 }
0x14f2   :  { %v677_v49 = vpop.permute.xlu0 %676  ;;  %v735_v13 = vsel %vm38_vm0, %v734_v62, %v721_v56 }
0x14f3   :  { %v695_v63 = vsel %vm38_vm0, %v694_v61, %v677_v49  ;;  %v736_v7 = vsel %vm696_vm5, %v735_v13, %v724_v11 }
0x14f6   :  { %v680_v51 = vpop.permute.xlu0 %679 }
0x14f7   :  { %v697_v2 = vsel %vm696_vm5, %v695_v63, %v680_v51 }
0x14fa   :  { %v683_v58 = vpop.permute.xlu0 %682 }
0x14fb   :  { %v698_v3 = vsel %vm40_vm1, %v697_v2, %v683_v58 }
0x1514   :  { %s783_s19 = spop %782 }
0x1515   :  { %v704_v9 = vstv %s783_s19  ;;  %s785_s20 = spop %784 }
0x1516   :  { %v742_v18 = vstv %s785_s20 }
0x1553   :  { %v687_v8 = vpop.permute.xlu0 %686  ;;  %v730_v10 = vpop.permute.xlu1 %729 }
0x1554   :  { %v700_v12 = vsel %vm699_vm6, %v698_v3, %v687_v8 }
0x1555   :  { %v706_v15 = vmul.f32 %v704_v9, %v700_v12 }
0x1557   :  { %v727_v5 = vpop.permute.xlu0 %726  ;;  %v707_v54 = vadd.f32 %v706_v15, %v662_v17 }
0x1558   :  { %v737_v19 = vsel %vm40_vm1, %v736_v7, %v727_v5 }
0x1559   :  { %v738_v20 = vsel %vm699_vm6, %v737_v19, %v730_v10 }
0x155a   :  { %v744_v21 = vmul.f32 %v742_v18, %v738_v20 }
0x155c   :  { %v745_v25 = vadd.f32 %v744_v21, %v707_v54 }
0x155e   :  { %747 = vst.msk [vmem:[#allocation7] sm:$0x3] %vm746_vm7, %v745_v25 }
0x155f   :  { %956 = shalt.err (!%p953_p6)
}
0x1560   :  { %s957_s26 = scalar_lea.hbm %s1295_s2, 32 }
0x1561   :  { %p958_p7 = scmp.ne.s32.totalorder %s1295_s2, %s957_s26  ;;  %p961_p8 = scmp.lt.u32.totalorder %s957_s26, %s1295_s2 }
0x1563   :  { %p963_p9 = pnand %p961_p8, %p958_p7 }
0x1565   :  { %966 = shalt.err (!%p963_p9)
}
0x1566   :  { %757 = dma.vmem_to_hbm [thread:$0]  %s755_s22, 32, %s1295_s2, [#allocation4]  }
0x1567   :  { %971 = dma.done.wait [#allocation4], 32  }
0x1568   :  { %972 = vsyncadd [#allocation4], 4294967264 }
0x1569   :  { %761 = vsyncpa [#allocation3], 1 }
0x156a   :  { %762 = vsyncpa [#allocation6], 1 }
0x156b   :  { %763 = vsyncpa [#allocation4], 1 }

</bundles_post_ra>
